<compile_context>
chip_gen: v7x
topology: tpu7x:2x2x1
jax: 0.10.0
libtpu: 0.0.40
codegen_flags: <defaults>
</compile_context>

<pallas_src>
import functools
import math

import numpy as np

import jax
import jax.numpy as jnp
from jax.experimental import pallas as pl
from jax.experimental.pallas import tpu as pltpu


def _n_transforms(rot: bool, flip: bool) -> int:
    return (int(flip) + 1) * (3 * int(rot) + 1)


def _round_up(a: int, b: int) -> int:
    return (a + b - 1) // b * b


def _cdiv(a: int, b: int) -> int:
    return -(-a // b)


# ----------------------- host-side transform bookkeeping -----------------------

def _transform_index_grids(h: int, w: int, rot: bool, flip: bool):
    """T_t(idx) for every transform, in torch's cat(dim=1) order."""
    idx = np.arange(h * w).reshape(h, w)
    if not rot:
        return [idx, np.flip(idx, axis=-1)]
    ts = [idx] + [np.rot90(idx, k, axes=(-2, -1)) for k in (1, 2, 3)]
    if flip:
        f = np.flip(idx, axis=-1)
        ts += [f] + [np.rot90(f, k, axes=(-2, -1)) for k in (1, 2, 3)]
    return ts


def _permutation_matrix(h: int, w: int, rot: bool, flip: bool):
    """One-hot (HW, (T-1)*HW) bf16 matrix; column block t produces transform t+1.

    Transform 0 (identity) is excluded — the kernel stores the input directly.
    out[:, t*HW + i] = x[:, src_t[i]] with src_t = T_{t+1}(arange(HW).reshape(H,W)).
    """
    grids = _transform_index_grids(h, w, rot, flip)[1:]
    hw = h * w
    p = np.zeros((hw, len(grids) * hw), dtype=np.float32)
    cols = np.arange(hw)
    for t, g in enumerate(grids):
        p[g.reshape(-1), t * hw + cols] = 1.0
    return jnp.asarray(p, dtype=jnp.bfloat16)


# ----------------------------------- kernels -----------------------------------

def _permute_matmul_kernel(x_ref, p_ref, o_ref, *, hw: int, split: bool):
    """Lane-dense permutation kernel.

    x_ref: (gc_tile, HW); p_ref: (HW, (T-1)*HW) one-hot bf16;
    o_ref: (T, gc_tile, HW).
    """
    x = x_ref[...]
    o_ref[0] = x                                   # identity: plain copy, no matmul

    if split:
        # Exact f32/f16 permutation: split into 3 bf16 chunks (hi captures the
        # top 8 mantissa bits, mid the next 8, lo the remainder — the split and
        # the low->high re-summation are exact for finite normal values).
        xf = x if x.dtype == jnp.float32 else x.astype(jnp.float32)
        c_hi = xf.astype(jnp.bfloat16)
        r1 = xf - c_hi.astype(jnp.float32)
        c_mid = r1.astype(jnp.bfloat16)
        c_lo = (r1 - c_mid.astype(jnp.float32)).astype(jnp.bfloat16)
        parts = (c_lo, c_mid, c_hi)                # low -> high: exact re-sum
    else:
        parts = (x,)                               # bf16 input: single exact pass

    n_t = o_ref.shape[0]
    for t in range(n_t - 1):
        p_t = p_ref[:, t * hw:(t + 1) * hw]        # static, lane-aligned slice
        acc = jnp.dot(parts[0], p_t, preferred_element_type=jnp.float32)
        for part in parts[1:]:
            acc = acc + jnp.dot(part, p_t, preferred_element_type=jnp.float32)
        o_ref[t + 1] = acc.astype(o_ref.dtype)


def _flip_transforms(x, rot: bool, flip: bool):
    """All transforms of x (..., H, W), torch's cat order, shared intermediates."""
    if not rot:
        return (x, jnp.flip(x, axis=-1))
    xt = jnp.swapaxes(x, -2, -1)                   # transpose of the (H, W) plane
    r90 = jnp.flip(xt, axis=-2)                    # rot90(x, 1, (-2, -1))
    r270 = jnp.flip(xt, axis=-1)                   # rot90(x, 3, (-2, -1))
    xf = jnp.flip(x, axis=-1)                      # flip along torch h_dim
    r180 = jnp.flip(xf, axis=-2)                   # rot90(x, 2, (-2, -1))
    if not flip:
        return (x, r90, r180, r270)
    xh = jnp.flip(x, axis=-2)                      # == flip . rot180
    xtfh = jnp.flip(r90, axis=-1)                  # == flip . rot270
    return (x, r90, r180, r270, xf, xt, xh, xtfh)  # xt == flip . rot90


def _flip_kernel(x_ref, o_ref, *, rot: bool, flip: bool):
    """Fallback (exact for every dtype, incl. ints): XLU flips on (gc, H, W)."""
    x = x_ref[...]
    for i, v in enumerate(_flip_transforms(x, rot, flip)):
        o_ref[i] = v


# ------------------------------------ tiling -----------------------------------

def _vmem_caps():
    """(block budget, vmem_limit_bytes), generation-aware with a safe fallback."""
    try:
        phys = int(pltpu.get_tpu_info().vmem_capacity_bytes)
    except Exception:            # interpret mode / non-TPU backend / old API
        phys = 64 * 1024 * 1024  # v7x-sized assumption: safe on every generation
    return (phys * 3) // 8, (phys * 3) // 4


def _pick_gc_tile(gc: int, row_bytes: int, n_t: int, batch: int,
                  budget: int, step: int):
    """(gc_tile, gc_padded): largest sublane-aligned tile under the VMEM budget,
    with >= ~8 total grid steps (2-TC sharding / pipeline depth) and minimal
    wrapper-side padding.  No divisor-of-GC constraint."""
    # Double-buffered input + double-buffered T-wide output block, plus ~4
    # row-slabs of in-kernel intermediates (bf16 splits, matmul staging).
    per_row = (2 * (1 + n_t) + 4) * row_bytes
    cap_vmem = max(step, budget // per_row // step * step)
    target_blocks = max(1, _cdiv(8, max(1, batch)))        # >= ~8 grid steps
    cap_steps = max(step, _round_up(_cdiv(gc, target_blocks), step))
    cap = min(cap_vmem, cap_steps)
    if gc <= cap:
        return gc, gc            # single full-extent block (always layout-legal)
    best_tile, best_pad = step, _round_up(gc, step) - gc
    for tile in range(step, cap + 1, step):
        pad = _round_up(gc, tile) - gc
        if pad < best_pad or (pad == best_pad and tile > best_tile):
            best_tile, best_pad = tile, pad
    return best_tile, gc + best_pad


# ----------------------------------- wrapper ------------------------------------

def rotation_and_flip(x, rot: bool = True, flip: bool = True):
    """Pallas implementation of RotationAndFlipLayer.forward."""
    n_t = _n_transforms(rot, flip)
    C, H, W = x.shape[-3:]
    stacked = math.prod(x.shape[:-3])

    if not rot and not flip:
        # Pure reshape path — glue only, no kernel needed.
        return x.reshape(stacked, C, H, W)

    if x.ndim < 5:
        # The torch module itself fails at its final reshape for ndim < 5 when
        # transforms are active (cat(dim=1) hits a non-stack dim).
        raise ValueError("rotation_and_flip with transforms needs ndim >= 5 "
                         "(leading stack dim + channel dim), like the torch module")
    if rot and H != W:
        raise ValueError("rotations require square spatial dims")

    B = x.shape[0]
    M = math.prod(x.shape[1:-3])          # leading dims after the first
    GC = M * C                            # merged contiguous tiling axis
    HW = H * W
    itemsize = jnp.dtype(x.dtype).itemsize
    step = max(8, 32 // itemsize)         # sublane multiple: 8/f32, 16/bf16, 32/i8
    budget, vmem_limit = _vmem_caps()

    use_matmul = x.dtype in (jnp.float32, jnp.bfloat16, jnp.float16)
    if use_matmul:
        row_bytes = _round_up(HW, 128) * itemsize
    else:
        row_bytes = _round_up(H, step) * _round_up(W, 128) * itemsize

    gc_tile, gc_pad = _pick_gc_tile(GC, row_bytes, n_t, B, budget, step)
    grid = (B, gc_pad // gc_tile)

    # Wrapper-side lane-dense flatten (metadata-only when no padding is needed).
    x_in = x.reshape(B, GC, HW) if use_matmul else x.reshape(B, GC, H, W)
    if gc_pad != GC:
        pad_cfg = [(0, 0), (0, gc_pad - GC)] + [(0, 0)] * (x_in.ndim - 2)
        x_in = jnp.pad(x_in, pad_cfg)

    bytes_accessed = (1 + n_t) * B * gc_pad * HW * itemsize
    compiler_params = pltpu.CompilerParams(
        dimension_semantics=("parallel", "parallel"),
        vmem_limit_bytes=vmem_limit,
    )

    if use_matmul:
        split = x.dtype != jnp.bfloat16   # f32/f16 need the exact 3-way bf16 split
        p = _permutation_matrix(H, W, rot, flip)
        n_passes = 3 if split else 1
        flops = 2 * B * gc_pad * HW * int(p.shape[1]) * n_passes
        kernel = functools.partial(_permute_matmul_kernel, hw=HW, split=split)
        out = pl.pallas_call(
            kernel,
            out_shape=jax.ShapeDtypeStruct((B, n_t, gc_pad, HW), x.dtype),
            grid=grid,
            in_specs=[
                pl.BlockSpec((None, gc_tile, HW), lambda b, g: (b, g, 0)),
                # Constant block index -> the permutation matrix is DMA'd once
                # and stays resident in VMEM for the whole grid.
                pl.BlockSpec((HW, p.shape[1]), lambda b, g: (0, 0)),
            ],
            out_specs=pl.BlockSpec((None, n_t, gc_tile, HW),
                                   lambda b, g: (b, 0, g, 0)),
            compiler_params=compiler_params,
            cost_estimate=pl.CostEstimate(
                flops=flops, transcendentals=0,
                bytes_accessed=bytes_accessed + p.size * 2),
        )(x_in, p)
    else:
        # Exact dtype-agnostic fallback (ints etc.): XLU flips, lane-sparse.
        kernel = functools.partial(_flip_kernel, rot=rot, flip=flip)
        out = pl.pallas_call(
            kernel,
            out_shape=jax.ShapeDtypeStruct((B, n_t, gc_pad, H, W), x.dtype),
            grid=grid,
            in_specs=[pl.BlockSpec((None, gc_tile, H, W),
                                   lambda b, g: (b, g, 0, 0))],
            out_specs=pl.BlockSpec((None, n_t, gc_tile, H, W),
                                   lambda b, g: (b, 0, g, 0, 0)),
            compiler_params=compiler_params,
            cost_estimate=pl.CostEstimate(
                flops=0, transcendentals=0, bytes_accessed=bytes_accessed),
        )(x_in)

    if gc_pad != GC:
        out = out[:, :, :GC]
    # torch: cat(dim=1) -> flatten.  Flat row order is (dim0, transform,
    # remaining leading dims, C) = row-major flatten of (B, T, M, C, H, W).
    return out.reshape(stacked * n_t, C, H, W)


# ---------------------------------- reference -----------------------------------

def reference(x, rot: bool = True, flip: bool = True):
    """Pure-JAX mirror of the PyTorch forward, for verification (ndim >= 5
    when transforms are active, exactly like the torch module)."""
    n_t = _n_transforms(rot, flip)
    stacked = math.prod(x.shape[:-3])
    if not rot and not flip:
        return x.reshape(stacked, *x.shape[-3:])
    w_dim = x.ndim - 2
    h_dim = x.ndim - 1
    if not rot:
        ts = (x, jnp.flip(x, axis=h_dim))
    elif not flip:
        ts = (x,) + tuple(jnp.rot90(x, k, axes=(w_dim, h_dim)) for k in (1, 2, 3))
    else:
        f = jnp.flip(x, axis=h_dim)
        ts = ((x,)
              + tuple(jnp.rot90(x, k, axes=(w_dim, h_dim)) for k in (1, 2, 3))
              + (f,)
              + tuple(jnp.rot90(f, k, axes=(w_dim, h_dim)) for k in (1, 2, 3)))
    xc = jnp.concatenate(ts, axis=1)
    return xc.reshape(stacked * n_t, *xc.shape[-3:])


if __name__ == "__main__":
    key = jax.random.PRNGKey(0)
    B, G, C, H, W = 2, 3, 4, 16, 16
    x = jax.random.normal(key, (B, G, C, H, W), dtype=jnp.float32)

    # rot + flip (T = 8), float32 (exact 3-way bf16-split matmul path)
    out = jax.block_until_ready(rotation_and_flip(x, rot=True, flip=True))
    ref = reference(x, rot=True, flip=True)
    assert out.shape == ref.shape == (B * 8 * G, C, H, W), (out.shape, ref.shape)
    assert jnp.array_equal(out, ref), "mismatch vs reference (rot+flip, f32)"

    # rot only (T = 4)
    out_r = jax.block_until_ready(rotation_and_flip(x, rot=True, flip=False))
    assert jnp.array_equal(out_r, reference(x, rot=True, flip=False)), "rot-only mismatch"

    # flip only (T = 2)
    out_f = jax.block_until_ready(rotation_and_flip(x, rot=False, flip=True))
    assert jnp.array_equal(out_f, reference(x, rot=False, flip=True)), "flip-only mismatch"

    # bf16 (single-pass matmul path, exact)
    xb = x.astype(jnp.bfloat16)
    out_b = jax.block_until_ready(rotation_and_flip(xb, rot=True, flip=True))
    assert jnp.array_equal(out_b, reference(xb, rot=True, flip=True)), "bf16 mismatch"

    # no-op mode (pure reshape, no kernel); 4-D is fine here, as in torch.
    out_n = rotation_and_flip(x, rot=False, flip=False)
    assert jnp.array_equal(out_n, reference(x, rot=False, flip=False))
    x4 = jax.random.normal(jax.random.PRNGKey(1), (2, 4, 16, 16), dtype=jnp.float32)
    assert jnp.array_equal(rotation_and_flip(x4, rot=False, flip=False),
                           reference(x4, rot=False, flip=False))

    print("KERNEL_OK")
</pallas_src>

<mosaic_0001>
module attributes {stable_mosaic.version = 11 : i64} {
  func.func @_permute_matmul_kernel(%arg0: i32, %arg1: i32, %arg2: memref<1x8x256xf32, #tpu.memory_space<vmem>>, %arg3: memref<256x1792xbf16, #tpu.memory_space<vmem>>, %arg4: memref<1x8x8x256xf32, #tpu.memory_space<vmem>>) attributes {dimension_semantics = [#tpu.dimension_semantics<parallel>, #tpu.dimension_semantics<parallel>], iteration_bounds = array<i64: 2, 2>, scalar_prefetch = 0 : i64, scratch_operands = 0 : i64, tpu.core_type = #tpu.core_type<tc>, window_params = [{transform_indices = @transform_0, window_bounds = array<i64: 1, 8, 256>}, {pipeline_mode = #tpu.pipeline_mode<synchronous>, transform_indices = @transform_1, window_bounds = array<i64: 256, 1792>}, {transform_indices = @transform_2, window_bounds = array<i64: 1, 8, 8, 256>}]} {
    %c0 = arith.constant 0 : index
    %c0_0 = arith.constant 0 : index
    %c0_1 = arith.constant 0 : index
    %0 = vector.load %arg2[%c0, %c0_0, %c0_1] : memref<1x8x256xf32, #tpu.memory_space<vmem>>, vector<1x8x256xf32>
    %1 = vector.shape_cast %0 : vector<1x8x256xf32> to vector<8x256xf32>
    %c0_2 = arith.constant 0 : index
    %c0_3 = arith.constant 0 : index
    %c0_4 = arith.constant 0 : index
    %c0_5 = arith.constant 0 : index
    %2 = vector.load %arg4[%c0_2, %c0_3, %c0_4, %c0_5] : memref<1x8x8x256xf32, #tpu.memory_space<vmem>>, vector<1x1x8x256xf32>
    %3 = vector.shape_cast %2 : vector<1x1x8x256xf32> to vector<8x256xf32>
    %4 = vector.shape_cast %1 : vector<8x256xf32> to vector<1x1x8x256xf32>
    tpu.vector_store %arg4[%c0_2, %c0_3, %c0_4, %c0_5], %4 {strides = array<i32>} : memref<1x8x8x256xf32, #tpu.memory_space<vmem>>, vector<1x1x8x256xf32>,
    %5 = arith.truncf %1 : vector<8x256xf32> to vector<8x256xbf16>
    %6 = arith.extf %5 : vector<8x256xbf16> to vector<8x256xf32>
    %7 = arith.subf %1, %6 : vector<8x256xf32>
    %8 = arith.truncf %7 : vector<8x256xf32> to vector<8x256xbf16>
    %9 = arith.extf %8 : vector<8x256xbf16> to vector<8x256xf32>
    %10 = arith.subf %7, %9 : vector<8x256xf32>
    %11 = arith.truncf %10 : vector<8x256xf32> to vector<8x256xbf16>
    %c0_6 = arith.constant 0 : index
    %c0_7 = arith.constant 0 : index
    %12 = vector.load %arg3[%c0_6, %c0_7] : memref<256x1792xbf16, #tpu.memory_space<vmem>>, vector<256x256xbf16>
    %cst = arith.constant dense<0.000000e+00> : vector<8x256xf32>
    %13 = tpu.matmul %11, %12, %cst {dimension_numbers = #tpu.dot_dimension_numbers<[1], [0], [0], [1], [0, 0, 1, 1], [], []>} : vector<8x256xbf16>, vector<256x256xbf16>, vector<8x256xf32> -> vector<8x256xf32>
    %cst_8 = arith.constant dense<0.000000e+00> : vector<8x256xf32>
    %14 = tpu.matmul %8, %12, %cst_8 {dimension_numbers = #tpu.dot_dimension_numbers<[1], [0], [0], [1], [0, 0, 1, 1], [], []>} : vector<8x256xbf16>, vector<256x256xbf16>, vector<8x256xf32> -> vector<8x256xf32>
    %15 = arith.addf %13, %14 : vector<8x256xf32>
    %cst_9 = arith.constant dense<0.000000e+00> : vector<8x256xf32>
    %16 = tpu.matmul %5, %12, %cst_9 {dimension_numbers = #tpu.dot_dimension_numbers<[1], [0], [0], [1], [0, 0, 1, 1], [], []>} : vector<8x256xbf16>, vector<256x256xbf16>, vector<8x256xf32> -> vector<8x256xf32>
    %17 = arith.addf %15, %16 : vector<8x256xf32>
    %c0_10 = arith.constant 0 : index
    %c1 = arith.constant 1 : index
    %c0_11 = arith.constant 0 : index
    %c0_12 = arith.constant 0 : index
    %18 = vector.load %arg4[%c0_10, %c1, %c0_11, %c0_12] : memref<1x8x8x256xf32, #tpu.memory_space<vmem>>, vector<1x1x8x256xf32>
    %19 = vector.shape_cast %18 : vector<1x1x8x256xf32> to vector<8x256xf32>
    %20 = vector.shape_cast %17 : vector<8x256xf32> to vector<1x1x8x256xf32>
    tpu.vector_store %arg4[%c0_10, %c1, %c0_11, %c0_12], %20 {strides = array<i32>} : memref<1x8x8x256xf32, #tpu.memory_space<vmem>>, vector<1x1x8x256xf32>,
    %c0_13 = arith.constant 0 : index
    %c256 = arith.constant 256 : index
    %21 = vector.load %arg3[%c0_13, %c256] : memref<256x1792xbf16, #tpu.memory_space<vmem>>, vector<256x256xbf16>
    %cst_14 = arith.constant dense<0.000000e+00> : vector<8x256xf32>
    %22 = tpu.matmul %11, %21, %cst_14 {dimension_numbers = #tpu.dot_dimension_numbers<[1], [0], [0], [1], [0, 0, 1, 1], [], []>} : vector<8x256xbf16>, vector<256x256xbf16>, vector<8x256xf32> -> vector<8x256xf32>
    %cst_15 = arith.constant dense<0.000000e+00> : vector<8x256xf32>
    %23 = tpu.matmul %8, %21, %cst_15 {dimension_numbers = #tpu.dot_dimension_numbers<[1], [0], [0], [1], [0, 0, 1, 1], [], []>} : vector<8x256xbf16>, vector<256x256xbf16>, vector<8x256xf32> -> vector<8x256xf32>
    %24 = arith.addf %22, %23 : vector<8x256xf32>
    %cst_16 = arith.constant dense<0.000000e+00> : vector<8x256xf32>
    %25 = tpu.matmul %5, %21, %cst_16 {dimension_numbers = #tpu.dot_dimension_numbers<[1], [0], [0], [1], [0, 0, 1, 1], [], []>} : vector<8x256xbf16>, vector<256x256xbf16>, vector<8x256xf32> -> vector<8x256xf32>
    %26 = arith.addf %24, %25 : vector<8x256xf32>
    %c0_17 = arith.constant 0 : index
    %c2 = arith.constant 2 : index
    %c0_18 = arith.constant 0 : index
    %c0_19 = arith.constant 0 : index
    %27 = vector.load %arg4[%c0_17, %c2, %c0_18, %c0_19] : memref<1x8x8x256xf32, #tpu.memory_space<vmem>>, vector<1x1x8x256xf32>
    %28 = vector.shape_cast %27 : vector<1x1x8x256xf32> to vector<8x256xf32>
    %29 = vector.shape_cast %26 : vector<8x256xf32> to vector<1x1x8x256xf32>
    tpu.vector_store %arg4[%c0_17, %c2, %c0_18, %c0_19], %29 {strides = array<i32>} : memref<1x8x8x256xf32, #tpu.memory_space<vmem>>, vector<1x1x8x256xf32>,
    %c0_20 = arith.constant 0 : index
    %c512 = arith.constant 512 : index
    %30 = vector.load %arg3[%c0_20, %c512] : memref<256x1792xbf16, #tpu.memory_space<vmem>>, vector<256x256xbf16>
    %cst_21 = arith.constant dense<0.000000e+00> : vector<8x256xf32>
    %31 = tpu.matmul %11, %30, %cst_21 {dimension_numbers = #tpu.dot_dimension_numbers<[1], [0], [0], [1], [0, 0, 1, 1], [], []>} : vector<8x256xbf16>, vector<256x256xbf16>, vector<8x256xf32> -> vector<8x256xf32>
    %cst_22 = arith.constant dense<0.000000e+00> : vector<8x256xf32>
    %32 = tpu.matmul %8, %30, %cst_22 {dimension_numbers = #tpu.dot_dimension_numbers<[1], [0], [0], [1], [0, 0, 1, 1], [], []>} : vector<8x256xbf16>, vector<256x256xbf16>, vector<8x256xf32> -> vector<8x256xf32>
    %33 = arith.addf %31, %32 : vector<8x256xf32>
    %cst_23 = arith.constant dense<0.000000e+00> : vector<8x256xf32>
    %34 = tpu.matmul %5, %30, %cst_23 {dimension_numbers = #tpu.dot_dimension_numbers<[1], [0], [0], [1], [0, 0, 1, 1], [], []>} : vector<8x256xbf16>, vector<256x256xbf16>, vector<8x256xf32> -> vector<8x256xf32>
    %35 = arith.addf %33, %34 : vector<8x256xf32>
    %c0_24 = arith.constant 0 : index
    %c3 = arith.constant 3 : index
    %c0_25 = arith.constant 0 : index
    %c0_26 = arith.constant 0 : index
    %36 = vector.load %arg4[%c0_24, %c3, %c0_25, %c0_26] : memref<1x8x8x256xf32, #tpu.memory_space<vmem>>, vector<1x1x8x256xf32>
    %37 = vector.shape_cast %36 : vector<1x1x8x256xf32> to vector<8x256xf32>
    %38 = vector.shape_cast %35 : vector<8x256xf32> to vector<1x1x8x256xf32>
    tpu.vector_store %arg4[%c0_24, %c3, %c0_25, %c0_26], %38 {strides = array<i32>} : memref<1x8x8x256xf32, #tpu.memory_space<vmem>>, vector<1x1x8x256xf32>,
    %c0_27 = arith.constant 0 : index
    %c768 = arith.constant 768 : index
    %39 = vector.load %arg3[%c0_27, %c768] : memref<256x1792xbf16, #tpu.memory_space<vmem>>, vector<256x256xbf16>
    %cst_28 = arith.constant dense<0.000000e+00> : vector<8x256xf32>
    %40 = tpu.matmul %11, %39, %cst_28 {dimension_numbers = #tpu.dot_dimension_numbers<[1], [0], [0], [1], [0, 0, 1, 1], [], []>} : vector<8x256xbf16>, vector<256x256xbf16>, vector<8x256xf32> -> vector<8x256xf32>
    %cst_29 = arith.constant dense<0.000000e+00> : vector<8x256xf32>
    %41 = tpu.matmul %8, %39, %cst_29 {dimension_numbers = #tpu.dot_dimension_numbers<[1], [0], [0], [1], [0, 0, 1, 1], [], []>} : vector<8x256xbf16>, vector<256x256xbf16>, vector<8x256xf32> -> vector<8x256xf32>
    %42 = arith.addf %40, %41 : vector<8x256xf32>
    %cst_30 = arith.constant dense<0.000000e+00> : vector<8x256xf32>
    %43 = tpu.matmul %5, %39, %cst_30 {dimension_numbers = #tpu.dot_dimension_numbers<[1], [0], [0], [1], [0, 0, 1, 1], [], []>} : vector<8x256xbf16>, vector<256x256xbf16>, vector<8x256xf32> -> vector<8x256xf32>
    %44 = arith.addf %42, %43 : vector<8x256xf32>
    %c0_31 = arith.constant 0 : index
    %c4 = arith.constant 4 : index
    %c0_32 = arith.constant 0 : index
    %c0_33 = arith.constant 0 : index
    %45 = vector.load %arg4[%c0_31, %c4, %c0_32, %c0_33] : memref<1x8x8x256xf32, #tpu.memory_space<vmem>>, vector<1x1x8x256xf32>
    %46 = vector.shape_cast %45 : vector<1x1x8x256xf32> to vector<8x256xf32>
    %47 = vector.shape_cast %44 : vector<8x256xf32> to vector<1x1x8x256xf32>
    tpu.vector_store %arg4[%c0_31, %c4, %c0_32, %c0_33], %47 {strides = array<i32>} : memref<1x8x8x256xf32, #tpu.memory_space<vmem>>, vector<1x1x8x256xf32>,
    %c0_34 = arith.constant 0 : index
    %c1024 = arith.constant 1024 : index
    %48 = vector.load %arg3[%c0_34, %c1024] : memref<256x1792xbf16, #tpu.memory_space<vmem>>, vector<256x256xbf16>
    %cst_35 = arith.constant dense<0.000000e+00> : vector<8x256xf32>
    %49 = tpu.matmul %11, %48, %cst_35 {dimension_numbers = #tpu.dot_dimension_numbers<[1], [0], [0], [1], [0, 0, 1, 1], [], []>} : vector<8x256xbf16>, vector<256x256xbf16>, vector<8x256xf32> -> vector<8x256xf32>
    %cst_36 = arith.constant dense<0.000000e+00> : vector<8x256xf32>
    %50 = tpu.matmul %8, %48, %cst_36 {dimension_numbers = #tpu.dot_dimension_numbers<[1], [0], [0], [1], [0, 0, 1, 1], [], []>} : vector<8x256xbf16>, vector<256x256xbf16>, vector<8x256xf32> -> vector<8x256xf32>
    %51 = arith.addf %49, %50 : vector<8x256xf32>
    %cst_37 = arith.constant dense<0.000000e+00> : vector<8x256xf32>
    %52 = tpu.matmul %5, %48, %cst_37 {dimension_numbers = #tpu.dot_dimension_numbers<[1], [0], [0], [1], [0, 0, 1, 1], [], []>} : vector<8x256xbf16>, vector<256x256xbf16>, vector<8x256xf32> -> vector<8x256xf32>
    %53 = arith.addf %51, %52 : vector<8x256xf32>
    %c0_38 = arith.constant 0 : index
    %c5 = arith.constant 5 : index
    %c0_39 = arith.constant 0 : index
    %c0_40 = arith.constant 0 : index
    %54 = vector.load %arg4[%c0_38, %c5, %c0_39, %c0_40] : memref<1x8x8x256xf32, #tpu.memory_space<vmem>>, vector<1x1x8x256xf32>
    %55 = vector.shape_cast %54 : vector<1x1x8x256xf32> to vector<8x256xf32>
    %56 = vector.shape_cast %53 : vector<8x256xf32> to vector<1x1x8x256xf32>
    tpu.vector_store %arg4[%c0_38, %c5, %c0_39, %c0_40], %56 {strides = array<i32>} : memref<1x8x8x256xf32, #tpu.memory_space<vmem>>, vector<1x1x8x256xf32>,
    %c0_41 = arith.constant 0 : index
    %c1280 = arith.constant 1280 : index
    %57 = vector.load %arg3[%c0_41, %c1280] : memref<256x1792xbf16, #tpu.memory_space<vmem>>, vector<256x256xbf16>
    %cst_42 = arith.constant dense<0.000000e+00> : vector<8x256xf32>
    %58 = tpu.matmul %11, %57, %cst_42 {dimension_numbers = #tpu.dot_dimension_numbers<[1], [0], [0], [1], [0, 0, 1, 1], [], []>} : vector<8x256xbf16>, vector<256x256xbf16>, vector<8x256xf32> -> vector<8x256xf32>
    %cst_43 = arith.constant dense<0.000000e+00> : vector<8x256xf32>
    %59 = tpu.matmul %8, %57, %cst_43 {dimension_numbers = #tpu.dot_dimension_numbers<[1], [0], [0], [1], [0, 0, 1, 1], [], []>} : vector<8x256xbf16>, vector<256x256xbf16>, vector<8x256xf32> -> vector<8x256xf32>
    %60 = arith.addf %58, %59 : vector<8x256xf32>
    %cst_44 = arith.constant dense<0.000000e+00> : vector<8x256xf32>
    %61 = tpu.matmul %5, %57, %cst_44 {dimension_numbers = #tpu.dot_dimension_numbers<[1], [0], [0], [1], [0, 0, 1, 1], [], []>} : vector<8x256xbf16>, vector<256x256xbf16>, vector<8x256xf32> -> vector<8x256xf32>
    %62 = arith.addf %60, %61 : vector<8x256xf32>
    %c0_45 = arith.constant 0 : index
    %c6 = arith.constant 6 : index
    %c0_46 = arith.constant 0 : index
    %c0_47 = arith.constant 0 : index
    %63 = vector.load %arg4[%c0_45, %c6, %c0_46, %c0_47] : memref<1x8x8x256xf32, #tpu.memory_space<vmem>>, vector<1x1x8x256xf32>
    %64 = vector.shape_cast %63 : vector<1x1x8x256xf32> to vector<8x256xf32>
    %65 = vector.shape_cast %62 : vector<8x256xf32> to vector<1x1x8x256xf32>
    tpu.vector_store %arg4[%c0_45, %c6, %c0_46, %c0_47], %65 {strides = array<i32>} : memref<1x8x8x256xf32, #tpu.memory_space<vmem>>, vector<1x1x8x256xf32>,
    %c0_48 = arith.constant 0 : index
    %c1536 = arith.constant 1536 : index
    %66 = vector.load %arg3[%c0_48, %c1536] : memref<256x1792xbf16, #tpu.memory_space<vmem>>, vector<256x256xbf16>
    %cst_49 = arith.constant dense<0.000000e+00> : vector<8x256xf32>
    %67 = tpu.matmul %11, %66, %cst_49 {dimension_numbers = #tpu.dot_dimension_numbers<[1], [0], [0], [1], [0, 0, 1, 1], [], []>} : vector<8x256xbf16>, vector<256x256xbf16>, vector<8x256xf32> -> vector<8x256xf32>
    %cst_50 = arith.constant dense<0.000000e+00> : vector<8x256xf32>
    %68 = tpu.matmul %8, %66, %cst_50 {dimension_numbers = #tpu.dot_dimension_numbers<[1], [0], [0], [1], [0, 0, 1, 1], [], []>} : vector<8x256xbf16>, vector<256x256xbf16>, vector<8x256xf32> -> vector<8x256xf32>
    %69 = arith.addf %67, %68 : vector<8x256xf32>
    %cst_51 = arith.constant dense<0.000000e+00> : vector<8x256xf32>
    %70 = tpu.matmul %5, %66, %cst_51 {dimension_numbers = #tpu.dot_dimension_numbers<[1], [0], [0], [1], [0, 0, 1, 1], [], []>} : vector<8x256xbf16>, vector<256x256xbf16>, vector<8x256xf32> -> vector<8x256xf32>
    %71 = arith.addf %69, %70 : vector<8x256xf32>
    %c0_52 = arith.constant 0 : index
    %c7 = arith.constant 7 : index
    %c0_53 = arith.constant 0 : index
    %c0_54 = arith.constant 0 : index
    %72 = vector.load %arg4[%c0_52, %c7, %c0_53, %c0_54] : memref<1x8x8x256xf32, #tpu.memory_space<vmem>>, vector<1x1x8x256xf32>
    %73 = vector.shape_cast %72 : vector<1x1x8x256xf32> to vector<8x256xf32>
    %74 = vector.shape_cast %71 : vector<8x256xf32> to vector<1x1x8x256xf32>
    tpu.vector_store %arg4[%c0_52, %c7, %c0_53, %c0_54], %74 {strides = array<i32>} : memref<1x8x8x256xf32, #tpu.memory_space<vmem>>, vector<1x1x8x256xf32>,
    return
  }
  func.func @transform_0(%arg0: i32, %arg1: i32) -> (i32, i32, i32) {
    %c0_i32 = arith.constant 0 : i32
    %c0_i32_0 = arith.constant 0 : i32
    return %arg0, %arg1, %c0_i32 : i32, i32, i32
  }
  func.func @transform_1(%arg0: i32, %arg1: i32) -> (i32, i32) {
    %c0_i32 = arith.constant 0 : i32
    %c0_i32_0 = arith.constant 0 : i32
    %c0_i32_1 = arith.constant 0 : i32
    return %c0_i32, %c0_i32_0 : i32, i32
  }
  func.func @transform_2(%arg0: i32, %arg1: i32) -> (i32, i32, i32, i32) {
    %c0_i32 = arith.constant 0 : i32
    %c0_i32_0 = arith.constant 0 : i32
    %c0_i32_1 = arith.constant 0 : i32
    return %arg0, %c0_i32, %arg1, %c0_i32_0 : i32, i32, i32, i32
  }
}

</mosaic_0001>

<bundles_post_ra>
// kernel: tpu_custom_call.1
= control target key start
LH: loop header
LB: loop body
LE: loop exit
PB: predicated region body
PF: predicated region fallthrough
CT: control target
= control target key end

     0   :  { %s4941_s0 = inlined_call_operand.hbm [shape: f32[2,16,256], index: 0, kind: input, shape index: {}]   ;;  %s4942_s1 = inlined_call_operand.hbm [shape: bf16[256,1792], index: 1, kind: input, shape index: {}]   ;;  %s4943_s2 = inlined_call_operand.hbm [shape: f32[2,8,16,256], index: 2, kind: output, shape index: {}]  }
   0x1   :  { %4970 = sst [smem:[#allocation20_spill]] %s4942_s1 }
   0x2   :  { %7 = vsyncpa [#allocation3], 0 }
   0x3   :  { %9 = vsyncpa [#allocation3 + $0x1], 0 }
   0x4   :  { %10 = vsyncpa [#allocation6], 0 }
   0x5   :  { %11 = vsyncpa [#allocation4], 0 }
   0x6   :  { %13 = vsyncpa [#allocation4 + $0x1], 0  ;;  %s3493_s9 = smov 0   ;;  %s3495_s10 = smov 0  }
   0x7   :  { %s3497_s11 = smov 0   ;;  %s3499_s12 = smov 0  }
   0x8   :  { %s3501_s13 = smov 0   ;;  %s3503_s14 = smov 0  }
   0x9   :  { %s3505_s15 = smov 0   ;;  %s3507_s16 = smov 0  }
   0xa LB: > { %4971 = sst [smem:[#allocation11_spill]] %s3460_s14  ;;  %s2567_s17 = sadd.s32 4294967295, %s3468_s16   ;;  %s3468_s16 = sphi %s3507_s16, %s19_s16   ;;  %s3464_s15 = sphi %s3505_s15, %s5027_s15   ;;  %s3460_s14 = sphi %s3503_s14, %s5021_s14   ;;  %s3456_s13 = sphi %s3501_s13, %s5026_s13   ;;  %s3452_s12 = sphi %s3499_s12, %s5020_s12   ;;  %s3448_s11 = sphi %s3497_s11, %s5025_s11   ;;  %s3444_s10 = sphi %s3495_s10, %s5024_s10   ;;  %s3440_s9 = sphi %s3493_s9, %s5023_s9  }
   0xb   : > { %s2568_s18 = sadd.s32 4294967294, %s3468_s16   ;;  %p53_p0 = scmp.ne.s32.totalorder %s3444_s10, %s3440_s9 }
   0xc   : > { %p3537_p1 = scmp.eq.s32.totalorder %s2567_s17, 0  ;;  %p3541_p2 = scmp.eq.s32.totalorder %s2567_s17, 3 }
   0xd   : > { %p106_p3 = scmp.eq.s32.totalorder %s2568_s18, 3  ;;  %p2569_p5 = scmp.ge.s32.totalorder %s3468_s16, 1 }
   0xe   : > { %s4972_s19 = scalar_select %p3537_p1, 1, 0 }
   0xf   : > { %s4973_s20 = scalar_select %p3541_p2, 1, 0 }
  0x10   : > { %p3547_p4 = por %p3537_p1, %p53_p0  ;;  %p3552_p6 = por %p106_p3, %p53_p0 }
  0x11   : > { %p113_p7 = scmp.lt.s32.totalorder %s3468_s16, 5  ;;  %s3470_s24 = smov [#allocation5]  }
  0x12   : > { %s4974_s21 = scalar_select %p3547_p4, 1, 0 }
  0x13   : > { %s4975_s22 = scalar_select %p3552_p6, 1, 0 }
  0x14   : > { %p3557_p8 = pnand %p2569_p5, %p113_p7  ;;  %s125_s25 = sshll.u32 %s3470_s24, 4  ;;  %s126_s25 = int_to_ptr.vmem [resolvable:$true] %s125_s25 }
  0x15   : > { %s4978_s1 = sld [smem:[#allocation20_spill]] }
  0x16   : > { %s4976_s23 = scalar_select %p3557_p8, 1, 0 }
  0x17   : > { %p2886_p9 = pneg %p3557_p8 }
  0x19   : > { %p3565_p10 = pnand %p2886_p9, %p3537_p1 }
  0x1b   : > { %s3308_s29 = scalar_lea.hbm %s4978_s1, 28672  ;;  %p3310_p12 = pneg %p3565_p10 }
  0x1c   : > { %p3309_p11 = scmp.ne.s32.totalorder %s4978_s1, %s3308_s29  ;;  %p3315_p3 = scmp.lt.u32.totalorder %s3308_s29, %s4978_s1 }
  0x1e   : > { %p3311_p13 = pnand %p3310_p12, %p3309_p11 }
  0x20   : > { %p3312_p0 = pneg %p3311_p13 }
  0x22   : > { %p3317_p5 = pnand %p3315_p3, %p3312_p0 }
  0x24   : > { %3320 = shalt.err (!%p3317_p5)
}
  0x25   : > { %s3321_s6 = scalar_lea.vmem %s126_s25, 28672  ;;  %p3329_p1 = scmp.lt.s32.totalorder %s126_s25, %s126_s25 }
  0x26   : > { %p3322_p7 = scmp.ne.s32.totalorder %s126_s25, %s3321_s6  ;;  %p3330_p4 = scmp.lt.s32.totalorder %s3321_s6, %s3321_s6 }
  0x28   : > { %p3324_p9 = pnand %p3322_p7, %p3310_p12  ;;  %p3331_p8 = por %p3330_p4, %p3329_p1 }
  0x2a   : > { %p3325_p6 = pneg %p3324_p9 }
  0x2c   : > { %p3332_p2 = pnand %p3331_p8, %p3325_p6 }
  0x2e   : > { %3335 = shalt.err (!%p3332_p2)
}
  0x2f   : > { %s3471_s7 = smov 896   ;;  %s3472_s8 = smov 56  }
  0x30   : > { %2889 = dma.hbm_to_vmem [thread:$0]  (!%p3565_p10), %s4978_s1, 28672, %s126_s25, [#allocation6], %s3471_s7, %s3471_s7, %s3472_s8  }
  0x31   : > { %s28_s24 = sadd.s32 1, %s3460_s14  ;;  %s31_s27 = sadd.s32 1, %s3464_s15 }
  0x32   : > { %p29_p1 = scmp.ge.s32.totalorder %s28_s24, 2  ;;  %s40_s28 = sadd.s32 1, %s3448_s11 }
  0x33   : > { %p47_p2 = scmp.ne.s32.totalorder %s3448_s11, %s3444_s10  ;;  %p48_p4 = scmp.eq.s32.totalorder %s3468_s16, 0 }
  0x34   : > { %s5029_s24 = smov (%p29_p1, %s28_s24), 0  ;;  %s5031_s27 = smov (!%p29_p1, %s31_s27), %s3464_s15 }
  0x35   : > { %4979 = sst [smem:[#allocation12_spill]] %s5029_s24  ;;  %s36_s29 = ssub.s32 %s3460_s14, %s5029_s24 }
  0x36   : > { %p33_p6 = scmp.ge.s32.totalorder %s5031_s27, 2  ;;  %p4980_p8 = scmp.ne.s32.totalorder %s4973_s20, 0 }
  0x37   : > { %p3602_p10 = por %p48_p4, %p47_p2  ;;  %p2899_p12 = scmp.lt.s32.totalorder %s3468_s16, 4 }
  0x38   : > { %p3598_p11 = por %p4980_p8, %p47_p2  ;;  %s5033_s27 = smov (%p33_p6, %s5031_s27), 0 }
  0x39   : > { %4983 = sst [smem:[#allocation13_spill]] %s5033_s27  ;;  %s139_s30 = sand.u32 1, %s3448_s11  }
  0x3a   : > { %s2573_s3 = sshll.u32 %s3460_s14, 1  ;;  %s35_s4 = ssub.s32 %s3464_s15, %s5033_s27 }
  0x3b   : > { %s37_s5 = sor.u32 %s36_s29, %s35_s4  ;;  %s2572_s6 = sshll.u32 %s139_s30, 4 }
  0x3c   : > { %p38_p13 = scmp.eq.s32.totalorder %s37_s5, 0  ;;  %s2574_s20 = sshll.u32 %s3464_s15, 2 }
  0x3d   : > { %s143_s7 = scalar_lea.vmem [#allocation2], %s2572_s6  ;;  %s149_s18 = sadd.s32 %s2574_s20, %s2573_s3 }
  0x3e   : > { %s153_s8 = sshll.u32 %s143_s7, 4  ;;  %s2575_s1 = sshll.u32 %s149_s18, 7  ;;  %s3617_s8 = int_to_ptr.vmem [resolvable:$true] %s153_s8 }
  0x3f   : > { %s3615_s17 = scalar_select %p38_p13, %s3448_s11, %s40_s28  }
  0x40   : > { %p3623_p0 = pnand %p2899_p12, %p3602_p10  ;;  %s3630_s29 = scalar_lea.hbm %s4941_s0, %s2575_s1 }
  0x41   : > { %s140_s28 = scalar_lea.sflag [#allocation3], %s139_s30  ;;  %s3336_s3 = scalar_lea.hbm %s3630_s29, 256 }
  0x42   : > { %p3337_p3 = scmp.ne.s32.totalorder %s3630_s29, %s3336_s3  ;;  %p3338_p5 = pneg %p3623_p0 }
  0x43   : > { %s3341_s14 = scalar_lea.hbm %s4941_s0, 1024  ;;  %p3342_p1 = scmp.lt.u32.totalorder %s3630_s29, %s4941_s0 }
  0x44   : > { %p3339_p7 = pnand %p3338_p5, %p3337_p3  ;;  %p3343_p2 = scmp.lt.u32.totalorder %s3341_s14, %s3336_s3 }
  0x45   : > { %p3345_p6 = scmp.lt.u32.totalorder %s3336_s3, %s3630_s29 }
  0x46   : > { %p3340_p9 = pneg %p3339_p7  ;;  %p3344_p4 = por %p3343_p2, %p3342_p1 }
  0x48   : > { %p3346_p8 = por %p3345_p6, %p3344_p4 }
  0x4a   : > { %p3347_p10 = pnand %p3346_p8, %p3340_p9 }
  0x4c   : > { %3350 = shalt.err (!%p3347_p10)
}
  0x4d   : > { %s3351_s30 = scalar_lea.vmem %s3617_s8, 256  ;;  %s3473_s5 = smov [#allocation2]  }
  0x4e   : > { %p3352_p12 = scmp.ne.s32.totalorder %s3617_s8, %s3351_s30  ;;  %s3356_s6 = sshll.u32 %s3473_s5, 4  ;;  %s3357_s6 = int_to_ptr.vmem [resolvable:$false] %s3356_s6 }
  0x4f   : > { %s3358_s20 = scalar_lea.vmem %s3357_s6, 512  ;;  %p3359_p7 = scmp.lt.s32.totalorder %s3617_s8, %s3357_s6 }
  0x50   : > { %p3354_p13 = pnand %p3352_p12, %p3338_p5  ;;  %p3360_p1 = scmp.lt.s32.totalorder %s3358_s20, %s3351_s30 }
  0x52   : > { %p3355_p3 = pneg %p3354_p13  ;;  %p3361_p2 = por %p3360_p1, %p3359_p7 }
  0x54   : > { %p3362_p4 = pnand %p3361_p2, %p3355_p3 }
  0x56   : > { %3365 = shalt.err (!%p3362_p4)
}
  0x57   : > { %2893 = dma.hbm_to_vmem [thread:$0]  (!%p3623_p0), %s3630_s29, 256, %s3617_s8, %s140_s28  }
  0x58   : > { %p4985_p9 = scmp.ne.s32.totalorder %s4976_s23, 0 }
  0x5a   : > { %162 = sbr.rel (%p4985_p9) target bundleno = 1039 (0x40f), region = 28 }
  0x61   : > { %s3660_s7 = sand.u32 1, %s3444_s10   ;;  %p4986_p5 = scmp.ne.s32.totalorder %s4974_s21, 0 }
  0x62   : > { %s2577_s18 = sshll.u32 %s3660_s7, 4  ;;  %s165_s3 = scalar_lea.sflag [#allocation3], %s3660_s7 }
  0x63   : > { %s3664_s25 = scalar_lea.vmem [#allocation2], %s2577_s18 }
  0x64   : > { %3427 = dma.done.wait (%p4986_p5), %s165_s3, 256  }
  0x65   : > { %3429 = vsyncadd (%p4986_p5), %s165_s3, 4294967040  ;;  %p4987_p0 = scmp.ne.s32.totalorder %s4972_s19, 0 }
  0x67   : > { %3431 = dma.done.wait (%p4987_p0), [#allocation6], 28672  }
  0x68   : > { %3433 = vsyncadd (%p4987_p0), [#allocation6], 4294938624  ;;  %v3674_v0 = vld [vmem:[#allocation5 + $0x4] ss:$56 sps:$4 sm:$0xff]   ;;  %v3676_v1 = vld [vmem:[#allocation5] ss:$56 sps:$4 sm:$0xff]  }
  0x69   : > { %403 = vmatprep.subr.bf16.mxu1 %v3674_v0  ;;  %444 = vmatprep.subr.bf16.mxu0 %v3674_v0  ;;  %v3680_v2 = vld [vmem:[#allocation5 + $0x74] ss:$56 sps:$4 sm:$0xff]   ;;  %v3684_v3 = vld [vmem:[#allocation5 + $0x70] ss:$56 sps:$4 sm:$0xff]   ;;  %v3688_v4 = vld [vmem:[#allocation5 + $0xe4] ss:$56 sps:$4 sm:$0xff]  }
  0x6a   : > { %404 = vmatpush1.bf16.msra.mxu1 %v3676_v1  ;;  %445 = vmatpush1.bf16.msra.mxu0 %v3676_v1  ;;  %v3692_v5 = vld [vmem:[#allocation5 + $0xe0] ss:$56 sps:$4 sm:$0xff]   ;;  %v3696_v6 = vld [vmem:[#allocation5 + $0x154] ss:$56 sps:$4 sm:$0xff]   ;;  %v3700_v7 = vld [vmem:[#allocation5 + $0x150] ss:$56 sps:$4 sm:$0xff]  }
  0x6b   : > { %405 = vmatprep.subr.bf16.mxu1 %v3680_v2  ;;  %446 = vmatprep.subr.bf16.mxu0 %v3680_v2  ;;  %v3704_v8 = vld [vmem:[#allocation5 + $0x1c4] ss:$56 sps:$4 sm:$0xff]   ;;  %v3708_v9 = vld [vmem:[#allocation5 + $0x1c0] ss:$56 sps:$4 sm:$0xff]   ;;  %v3712_v10 = vld [vmem:[#allocation5 + $0x234] ss:$56 sps:$4 sm:$0xff]  }
  0x6c   : > { %s2579_s19 = sshll.u32 %s3660_s7, 7  ;;  %v3717_v11 = vld [vmem:[#allocation5 + $0x230] ss:$56 sps:$4 sm:$0xff]   ;;  %v3721_v12 = vld [vmem:[#allocation5 + $0x2a4] ss:$56 sps:$4 sm:$0xff]   ;;  %s2819_s23 = sshll.u32 %s3452_s12, 1 }
  0x6d   : > { %v194_v13 = vld [vmem:[%s3664_s25 + $0x8] sm:$0xff]  ;;  %s3726_s21 = scalar_lea.vmem [#allocation7], %s2579_s19  ;;  %v193_v16 = vld [vmem:[%s3664_s25] sm:$0xff]  ;;  %s2820_s24 = sshll.u32 %s3456_s13, 5 }
  0x6e   : > { %406 = vmatpush1.bf16.msra.mxu1 %v3684_v3  ;;  %447 = vmatpush1.bf16.msra.mxu0 %v3684_v3  ;;  %v3724_v14 = vld [vmem:[#allocation5 + $0x2a0] ss:$56 sps:$4 sm:$0xff]   ;;  %196 = vst [vmem:[%s3726_s21 + $0x8] sm:$0xff] %v194_v13  ;;  %v3729_v15 = vpack.c.bf16 %v194_v13, %v194_v13  ;;  %v3736_v17 = vld [vmem:[#allocation5 + $0x314] ss:$56 sps:$4 sm:$0xff]   ;;  %195 = vst [vmem:[%s3726_s21] sm:$0xff] %v193_v16  ;;  %v3771_v30 = vpack.c.bf16 %v193_v16, %v193_v16  ;;  %s2464_s8 = sadd.s32 %s2820_s24, %s2819_s23  ;;  %s2467_s28 = sshll.u32 %s3726_s21, 4  ;;  %s4885_s28 = int_to_ptr.vmem [resolvable:$true] %s2467_s28 }
  0x6f   : > { %407 = vmatprep.subr.bf16.mxu1 %v3688_v4  ;;  %448 = vmatprep.subr.bf16.mxu0 %v3688_v4  ;;  %v3742_v20 = vld [vmem:[#allocation5 + $0x310] ss:$56 sps:$4 sm:$0xff]   ;;  %v3746_v21 = vld [vmem:[#allocation5 + $0x384] ss:$56 sps:$4 sm:$0xff]   ;;  %v3754_v24 = vld [vmem:[#allocation5 + $0x380] ss:$56 sps:$4 sm:$0xff]  }
  0x70   : > { %v200_v18 = vunpack.c.l.bf16 %v3729_v15  ;;  %v3758_v25 = vld [vmem:[#allocation5 + $0x3f4] ss:$56 sps:$4 sm:$0xff]   ;;  %v3764_v28 = vld [vmem:[#allocation5 + $0x3f0] ss:$56 sps:$4 sm:$0xff]   ;;  %v3768_v29 = vld [vmem:[#allocation5 + $0x464] ss:$56 sps:$4 sm:$0xff]   ;;  %v199_v33 = vunpack.c.l.bf16 %v3771_v30 }
  0x71   : > { %4989 = vst [vmem:[#allocation15_spill] sm:$0xff] %v3771_v30  ;;  %v3775_v31 = vld [vmem:[#allocation5 + $0x460] ss:$56 sps:$4 sm:$0xff]   ;;  %v3779_v32 = vld [vmem:[#allocation5 + $0x4d4] ss:$56 sps:$4 sm:$0xff]   ;;  %s2821_s29 = sshll.u32 %s2464_s8, 7 }
  0x72   : > { %408 = vmatpush1.bf16.msra.mxu1 %v3692_v5  ;;  %449 = vmatpush1.bf16.msra.mxu0 %v3692_v5  ;;  %v202_v19 = vsub.f32 %v194_v13, %v200_v18  ;;  %v3784_v34 = vld [vmem:[#allocation5 + $0x4d0] ss:$56 sps:$4 sm:$0xff]   ;;  %v3788_v35 = vld [vmem:[#allocation5 + $0x544] ss:$56 sps:$4 sm:$0xff]   ;;  %v201_v36 = vsub.f32 %v193_v16, %v199_v33  ;;  %v3792_v37 = vld [vmem:[#allocation5 + $0x540] ss:$56 sps:$4 sm:$0xff]   ;;  %s4883_s27 = scalar_lea.hbm %s4943_s2, %s2821_s29 }
  0x73   : > { %409 = vmatprep.subr.bf16.mxu1 %v3696_v6  ;;  %450 = vmatprep.subr.bf16.mxu0 %v3696_v6  ;;  %v3796_v38 = vld [vmem:[#allocation5 + $0x5b4] ss:$56 sps:$4 sm:$0xff]   ;;  %v3802_v40 = vld [vmem:[#allocation5 + $0x5b0] ss:$56 sps:$4 sm:$0xff]   ;;  %v3806_v41 = vld [vmem:[#allocation5 + $0x624] ss:$56 sps:$4 sm:$0xff]  }
  0x74   : > { %v3748_v22 = vpack.c.bf16 %v202_v19, %v202_v19  ;;  %v3798_v39 = vpack.c.bf16 %v201_v36, %v201_v36  ;;  %v3811_v43 = vld [vmem:[#allocation5 + $0x620] ss:$56 sps:$4 sm:$0xff]   ;;  %v3815_v44 = vld [vmem:[#allocation5 + $0x694] ss:$56 sps:$4 sm:$0xff]   ;;  %v3819_v46 = vld [vmem:[#allocation5 + $0x690] ss:$56 sps:$4 sm:$0xff]  }
  0x75   : > { %v3823_v47 = vld [vmem:[#allocation5 + $0xc] ss:$56 sps:$4 sm:$0xff]   ;;  %v3829_v49 = vld [vmem:[#allocation5 + $0x8] ss:$56 sps:$4 sm:$0xff]   ;;  %v3833_v50 = vld [vmem:[#allocation5 + $0x7c] ss:$56 sps:$4 sm:$0xff]  }
  0x76   : > { %410 = vmatpush1.bf16.msra.mxu1 %v3700_v7  ;;  %451 = vmatpush1.bf16.msra.mxu0 %v3700_v7  ;;  %4988 = vst [vmem:[#allocation14_spill] sm:$0xff] %v3748_v22  ;;  %v206_v23 = vunpack.c.l.bf16 %v3748_v22  ;;  %v205_v42 = vunpack.c.l.bf16 %v3798_v39  ;;  %v3835_v51 = vld [vmem:[#allocation5 + $0x78] ss:$56 sps:$4 sm:$0xff]   ;;  %v3839_v52 = vld [vmem:[#allocation5 + $0xec] ss:$56 sps:$4 sm:$0xff]   ;;  %s2452_s12 = scalar_lea.sflag [#allocation4], %s3660_s7 }
  0x77   : > { %411 = vmatprep.subr.bf16.mxu1 %v3704_v8  ;;  %452 = vmatprep.subr.bf16.mxu0 %v3704_v8  ;;  %v3845_v53 = vld [vmem:[#allocation5 + $0xe8] ss:$56 sps:$4 sm:$0xff]   ;;  %v3849_v54 = vld [vmem:[#allocation5 + $0x15c] ss:$56 sps:$4 sm:$0xff]   ;;  %v3855_v55 = vld [vmem:[#allocation5 + $0x158] ss:$56 sps:$4 sm:$0xff]  }
  0x78   : > { %435 = vmatprep.mubr.bf16.mxu1 %v3748_v22  ;;  %v208_v26 = vsub.f32 %v202_v19, %v206_v23  ;;  %v207_v45 = vsub.f32 %v201_v36, %v205_v42  ;;  %v3857_v56 = vld [vmem:[#allocation5 + $0x1cc] ss:$56 sps:$4 sm:$0xff]   ;;  %v3863_v57 = vld [vmem:[#allocation5 + $0x1c8] ss:$56 sps:$4 sm:$0xff]   ;;  %v3865_v58 = vld [vmem:[#allocation5 + $0x23c] ss:$56 sps:$4 sm:$0xff]  }
  0x79   : > { %v3871_v59 = vld [vmem:[#allocation5 + $0x238] ss:$56 sps:$4 sm:$0xff]   ;;  %v3873_v60 = vld [vmem:[#allocation5 + $0x2ac] ss:$56 sps:$4 sm:$0xff]   ;;  %v3879_v61 = vld [vmem:[#allocation5 + $0x2a8] ss:$56 sps:$4 sm:$0xff]  }
  0x7a   : > { %412 = vmatpush1.bf16.msra.mxu1 %v3708_v9  ;;  %453 = vmatpush1.bf16.msra.mxu0 %v3708_v9  ;;  %v3760_v27 = vpack.c.bf16 %v208_v26, %v208_v26  ;;  %v3825_v48 = vpack.c.bf16 %v207_v45, %v207_v45  ;;  %v3881_v62 = vld [vmem:[#allocation5 + $0x31c] ss:$56 sps:$4 sm:$0xff]   ;;  %v3887_v63 = vld [vmem:[#allocation5 + $0x318] ss:$56 sps:$4 sm:$0xff]   ;;  %v3945_v13 = vld [vmem:[#allocation5 + $0x628] ss:$56 sps:$4 sm:$0xff]  }
  0x7b   : > { %413 = vmatprep.subr.bf16.mxu1 %v3712_v10  ;;  %454 = vmatprep.subr.bf16.mxu0 %v3712_v10  ;;  %v3953_v16 = vld [vmem:[#allocation5 + $0x698] ss:$56 sps:$4 sm:$0xff]   ;;  %v3965_v19 = vld [vmem:[#allocation5 + $0x84] ss:$56 sps:$4 sm:$0xff]   ;;  %v3993_v26 = vld [vmem:[#allocation5 + $0x1d4] ss:$56 sps:$4 sm:$0xff]  }
  0x7c   : > { %476 = vmatprep.mubr.bf16.mxu0 %v3760_v27  ;;  %v3961_v18 = vld [vmem:[#allocation5 + $0x10] ss:$56 sps:$4 sm:$0xff]   ;;  %v4025_v36 = vld [vmem:[#allocation5 + $0x394] ss:$56 sps:$4 sm:$0xff]   ;;  %s3366_s13 = scalar_lea.vmem %s4885_s28, 2048  ;;  %s3474_s1 = smov [#allocation7]  }
  0x7d   : > { %v3981_v23 = vld [vmem:[#allocation5 + $0xf0] ss:$56 sps:$4 sm:$0xff]   ;;  %v4057_v45 = vld [vmem:[#allocation5 + $0x554] ss:$56 sps:$4 sm:$0xff]   ;;  %p3367_p6 = scmp.ne.s32.totalorder %s4885_s28, %s3366_s13  ;;  %s3370_s30 = sshll.u32 %s3474_s1, 4  ;;  %s3371_s30 = int_to_ptr.vmem [resolvable:$false] %s3370_s30 }
  0x7e   : > { %414 = vmatpush1.bf16.msra.mxu1 %v3717_v11  ;;  %455 = vmatpush1.bf16.msra.mxu0 %v3717_v11  ;;  %v4013_v33 = vld [vmem:[#allocation5 + $0x2b0] ss:$56 sps:$4 sm:$0xff]   ;;  %s3372_s5 = scalar_lea.vmem %s3371_s30, 4096  ;;  %p3373_p12 = scmp.lt.s32.totalorder %s4885_s28, %s3371_s30 }
  0x7f   : > { %415 = vmatprep.subr.bf16.mxu1 %v3721_v12  ;;  %456 = vmatprep.subr.bf16.mxu0 %v3721_v12  ;;  %v4045_v42 = vld [vmem:[#allocation5 + $0x470] ss:$56 sps:$4 sm:$0xff]   ;;  %p3368_p8 = pnand %p3367_p6, %p3598_p11  ;;  %p3374_p13 = scmp.lt.s32.totalorder %s3372_s5, %s3366_s13 }
  0x81   : > { %p3369_p10 = pneg %p3368_p8  ;;  %p3375_p3 = por %p3374_p13, %p3373_p12 }
  0x82   : > { %416 = vmatpush1.bf16.msra.mxu1 %v3724_v14  ;;  %457 = vmatpush1.bf16.msra.mxu0 %v3724_v14 }
  0x83   : > { %417 = vmatprep.subr.bf16.mxu1 %v3736_v17  ;;  %458 = vmatprep.subr.bf16.mxu0 %v3736_v17  ;;  %p3376_p7 = pnand %p3375_p3, %p3369_p10 }
  0x86   : > { %418 = vmatpush1.bf16.msra.mxu1 %v3742_v20  ;;  %459 = vmatpush1.bf16.msra.mxu0 %v3742_v20 }
  0x87   : > { %419 = vmatprep.subr.bf16.mxu1 %v3746_v21  ;;  %460 = vmatprep.subr.bf16.mxu0 %v3746_v21 }
  0x8a   : > { %420 = vmatpush1.bf16.msra.mxu1 %v3754_v24  ;;  %461 = vmatpush1.bf16.msra.mxu0 %v3754_v24 }
  0x8b   : > { %421 = vmatprep.subr.bf16.mxu1 %v3758_v25  ;;  %462 = vmatprep.subr.bf16.mxu0 %v3758_v25 }
  0x8e   : > { %422 = vmatpush1.bf16.msra.mxu1 %v3764_v28  ;;  %463 = vmatpush1.bf16.msra.mxu0 %v3764_v28 }
  0x8f   : > { %423 = vmatprep.subr.bf16.mxu1 %v3768_v29  ;;  %464 = vmatprep.subr.bf16.mxu0 %v3768_v29 }
  0x92   : > { %424 = vmatpush1.bf16.msra.mxu1 %v3775_v31  ;;  %465 = vmatpush1.bf16.msra.mxu0 %v3775_v31 }
  0x93   : > { %425 = vmatprep.subr.bf16.mxu1 %v3779_v32  ;;  %466 = vmatprep.subr.bf16.mxu0 %v3779_v32 }
  0x96   : > { %426 = vmatpush1.bf16.msra.mxu1 %v3784_v34  ;;  %467 = vmatpush1.bf16.msra.mxu0 %v3784_v34 }
  0x97   : > { %427 = vmatprep.subr.bf16.mxu1 %v3788_v35  ;;  %468 = vmatprep.subr.bf16.mxu0 %v3788_v35 }
  0x9a   : > { %428 = vmatpush1.bf16.msra.mxu1 %v3792_v37  ;;  %469 = vmatpush1.bf16.msra.mxu0 %v3792_v37 }
  0x9b   : > { %429 = vmatprep.subr.bf16.mxu1 %v3796_v38  ;;  %470 = vmatprep.subr.bf16.mxu0 %v3796_v38 }
  0x9e   : > { %430 = vmatpush1.bf16.msra.mxu1 %v3802_v40  ;;  %471 = vmatpush1.bf16.msra.mxu0 %v3802_v40 }
  0x9f   : > { %431 = vmatprep.subr.bf16.mxu1 %v3806_v41  ;;  %472 = vmatprep.subr.bf16.mxu0 %v3806_v41 }
  0xa2   : > { %432 = vmatpush1.bf16.msra.mxu1 %v3811_v43  ;;  %473 = vmatpush1.bf16.msra.mxu0 %v3811_v43 }
  0xa3   : > { %433 = vmatprep.subr.bf16.mxu1 %v3815_v44  ;;  %474 = vmatprep.subr.bf16.mxu0 %v3815_v44 }
  0xa6   : > { %434 = vmatpush1.bf16.msra.mxu1 %v3819_v46  ;;  %475 = vmatpush1.bf16.msra.mxu0 %v3819_v46 }
  0xa7   : > { %485 = vmatprep.subr.bf16.mxu0 %v3674_v0  ;;  %723 = vmatprep.subr.bf16.mxu1 %v3823_v47  ;;  %v3889_v0 = vld [vmem:[#allocation5 + $0x38c] ss:$56 sps:$4 sm:$0xff]  }
  0xa9   : > { %436 = vmatmul.mubr.bf16.vlgmr.msra.gmra.mrb[0].mxu1 %v3798_v39  ;;  %477 = vmatmul.mubr.bf16.vlgmr.msra.gmra.mrb[0].mxu0 %v3825_v48 }
  0xaa   : > { %486 = vmatpush1.bf16.msra.mxu0 %v3676_v1  ;;  %724 = vmatpush1.bf16.msra.mxu1 %v3829_v49  ;;  %v3895_v1 = vld [vmem:[#allocation5 + $0x388] ss:$56 sps:$4 sm:$0xff]  }
  0xab   : > { %487 = vmatprep.subr.bf16.mxu0 %v3680_v2  ;;  %725 = vmatprep.subr.bf16.mxu1 %v3833_v50  ;;  %v3897_v2 = vld [vmem:[#allocation5 + $0x3fc] ss:$56 sps:$4 sm:$0xff]  }
  0xac   : > { %517 = vmatprep.mubr.bf16.mxu0 %v3729_v15  ;;  %755 = vmatprep.mubr.bf16.mxu1 %v3748_v22 }
  0xae   : > { %488 = vmatpush1.bf16.msra.mxu0 %v3684_v3  ;;  %726 = vmatpush1.bf16.msra.mxu1 %v3835_v51  ;;  %v3903_v3 = vld [vmem:[#allocation5 + $0x3f8] ss:$56 sps:$4 sm:$0xff]  }
  0xaf   : > { %489 = vmatprep.subr.bf16.mxu0 %v3688_v4  ;;  %727 = vmatprep.subr.bf16.mxu1 %v3839_v52  ;;  %v3905_v4 = vld [vmem:[#allocation5 + $0x46c] ss:$56 sps:$4 sm:$0xff]  }
  0xb2   : > { %490 = vmatpush1.bf16.msra.mxu0 %v3692_v5  ;;  %728 = vmatpush1.bf16.msra.mxu1 %v3845_v53  ;;  %v3911_v5 = vld [vmem:[#allocation5 + $0x468] ss:$56 sps:$4 sm:$0xff]  }
  0xb3   : > { %491 = vmatprep.subr.bf16.mxu0 %v3696_v6  ;;  %729 = vmatprep.subr.bf16.mxu1 %v3849_v54  ;;  %v3913_v6 = vld [vmem:[#allocation5 + $0x4dc] ss:$56 sps:$4 sm:$0xff]  }
  0xb6   : > { %492 = vmatpush1.bf16.msra.mxu0 %v3700_v7  ;;  %730 = vmatpush1.bf16.msra.mxu1 %v3855_v55  ;;  %v3921_v7 = vld [vmem:[#allocation5 + $0x4d8] ss:$56 sps:$4 sm:$0xff]  }
  0xb7   : > { %493 = vmatprep.subr.bf16.mxu0 %v3704_v8  ;;  %731 = vmatprep.subr.bf16.mxu1 %v3857_v56  ;;  %4990 = vst [vmem:[#allocation16_spill] sm:$0xff] %v3921_v7  ;;  %v3925_v8 = vld [vmem:[#allocation5 + $0x54c] ss:$56 sps:$4 sm:$0xff]  }
  0xb8   : > { %4991 = vst [vmem:[#allocation17_spill] sm:$0xff] %v3925_v8 }
  0xba   : > { %494 = vmatpush1.bf16.msra.mxu0 %v3708_v9  ;;  %732 = vmatpush1.bf16.msra.mxu1 %v3863_v57  ;;  %v3929_v9 = vld [vmem:[#allocation5 + $0x548] ss:$56 sps:$4 sm:$0xff]  }
  0xbb   : > { %495 = vmatprep.subr.bf16.mxu0 %v3712_v10  ;;  %733 = vmatprep.subr.bf16.mxu1 %v3865_v58  ;;  %4992 = vst [vmem:[#allocation18_spill] sm:$0xff] %v3929_v9  ;;  %v3933_v10 = vld [vmem:[#allocation5 + $0x5bc] ss:$56 sps:$4 sm:$0xff]  }
  0xbc   : > { %4993 = vst [vmem:[#allocation19_spill] sm:$0xff] %v3933_v10 }
  0xbe   : > { %496 = vmatpush1.bf16.msra.mxu0 %v3717_v11  ;;  %734 = vmatpush1.bf16.msra.mxu1 %v3871_v59  ;;  %v3937_v11 = vld [vmem:[#allocation5 + $0x5b8] ss:$56 sps:$4 sm:$0xff]  }
  0xbf   : > { %497 = vmatprep.subr.bf16.mxu0 %v3721_v12  ;;  %735 = vmatprep.subr.bf16.mxu1 %v3873_v60  ;;  %v3941_v12 = vld [vmem:[#allocation5 + $0x62c] ss:$56 sps:$4 sm:$0xff]  }
  0xc2   : > { %498 = vmatpush1.bf16.msra.mxu0 %v3724_v14  ;;  %736 = vmatpush1.bf16.msra.mxu1 %v3879_v61  ;;  %v3949_v14 = vld [vmem:[#allocation5 + $0x69c] ss:$56 sps:$4 sm:$0xff]  }
  0xc3   : > { %499 = vmatprep.subr.bf16.mxu0 %v3736_v17  ;;  %737 = vmatprep.subr.bf16.mxu1 %v3881_v62  ;;  %v3957_v17 = vld [vmem:[#allocation5 + $0x14] ss:$56 sps:$4 sm:$0xff]  }
  0xc6   : > { %500 = vmatpush1.bf16.msra.mxu0 %v3742_v20  ;;  %738 = vmatpush1.bf16.msra.mxu1 %v3887_v63  ;;  %v3971_v20 = vld [vmem:[#allocation5 + $0x80] ss:$56 sps:$4 sm:$0xff]  }
  0xc7   : > { %501 = vmatprep.subr.bf16.mxu0 %v3746_v21  ;;  %739 = vmatprep.subr.bf16.mxu1 %v3889_v0  ;;  %v3975_v21 = vld [vmem:[#allocation5 + $0xf4] ss:$56 sps:$4 sm:$0xff]  }
  0xca   : > { %502 = vmatpush1.bf16.msra.mxu0 %v3754_v24  ;;  %740 = vmatpush1.bf16.msra.mxu1 %v3895_v1  ;;  %v3985_v24 = vld [vmem:[#allocation5 + $0x164] ss:$56 sps:$4 sm:$0xff]  }
  0xcb   : > { %503 = vmatprep.subr.bf16.mxu0 %v3758_v25  ;;  %741 = vmatprep.subr.bf16.mxu1 %v3897_v2  ;;  %v3989_v25 = vld [vmem:[#allocation5 + $0x160] ss:$56 sps:$4 sm:$0xff]  }
  0xce   : > { %504 = vmatpush1.bf16.msra.mxu0 %v3764_v28  ;;  %742 = vmatpush1.bf16.msra.mxu1 %v3903_v3  ;;  %v3997_v28 = vld [vmem:[#allocation5 + $0x1d0] ss:$56 sps:$4 sm:$0xff]  }
  0xcf   : > { %505 = vmatprep.subr.bf16.mxu0 %v3768_v29  ;;  %743 = vmatprep.subr.bf16.mxu1 %v3905_v4  ;;  %v4001_v29 = vld [vmem:[#allocation5 + $0x244] ss:$56 sps:$4 sm:$0xff]  }
  0xd2   : > { %506 = vmatpush1.bf16.msra.mxu0 %v3775_v31  ;;  %744 = vmatpush1.bf16.msra.mxu1 %v3911_v5  ;;  %v4005_v31 = vld [vmem:[#allocation5 + $0x240] ss:$56 sps:$4 sm:$0xff]  }
  0xd3   : > { %507 = vmatprep.subr.bf16.mxu0 %v3779_v32  ;;  %745 = vmatprep.subr.bf16.mxu1 %v3913_v6  ;;  %v4009_v32 = vld [vmem:[#allocation5 + $0x2b4] ss:$56 sps:$4 sm:$0xff]  }
  0xd6   : > { %508 = vmatpush1.bf16.msra.mxu0 %v3784_v34  ;;  %746 = vmatpush1.bf16.msra.mxu1 %v3921_v7  ;;  %v4017_v34 = vld [vmem:[#allocation5 + $0x324] ss:$56 sps:$4 sm:$0xff]  }
  0xd7   : > { %509 = vmatprep.subr.bf16.mxu0 %v3788_v35  ;;  %747 = vmatprep.subr.bf16.mxu1 %v3925_v8  ;;  %v4021_v35 = vld [vmem:[#allocation5 + $0x320] ss:$56 sps:$4 sm:$0xff]  }
  0xda   : > { %510 = vmatpush1.bf16.msra.mxu0 %v3792_v37  ;;  %748 = vmatpush1.bf16.msra.mxu1 %v3929_v9  ;;  %v4029_v37 = vld [vmem:[#allocation5 + $0x390] ss:$56 sps:$4 sm:$0xff]  }
  0xdb   : > { %511 = vmatprep.subr.bf16.mxu0 %v3796_v38  ;;  %749 = vmatprep.subr.bf16.mxu1 %v3933_v10  ;;  %v4033_v38 = vld [vmem:[#allocation5 + $0x404] ss:$56 sps:$4 sm:$0xff]  }
  0xde   : > { %512 = vmatpush1.bf16.msra.mxu0 %v3802_v40  ;;  %750 = vmatpush1.bf16.msra.mxu1 %v3937_v11  ;;  %v4037_v40 = vld [vmem:[#allocation5 + $0x400] ss:$56 sps:$4 sm:$0xff]  }
  0xdf   : > { %513 = vmatprep.subr.bf16.mxu0 %v3806_v41  ;;  %751 = vmatprep.subr.bf16.mxu1 %v3941_v12  ;;  %v4041_v41 = vld [vmem:[#allocation5 + $0x474] ss:$56 sps:$4 sm:$0xff]  }
  0xe2   : > { %514 = vmatpush1.bf16.msra.mxu0 %v3811_v43  ;;  %752 = vmatpush1.bf16.msra.mxu1 %v3945_v13  ;;  %v4049_v43 = vld [vmem:[#allocation5 + $0x4e4] ss:$56 sps:$4 sm:$0xff]  }
  0xe3   : > { %515 = vmatprep.subr.bf16.mxu0 %v3815_v44  ;;  %753 = vmatprep.subr.bf16.mxu1 %v3949_v14  ;;  %v4053_v44 = vld [vmem:[#allocation5 + $0x4e0] ss:$56 sps:$4 sm:$0xff]  }
  0xe6   : > { %516 = vmatpush1.bf16.msra.mxu0 %v3819_v46  ;;  %754 = vmatpush1.bf16.msra.mxu1 %v3953_v16  ;;  %v4061_v46 = vld [vmem:[#allocation5 + $0x550] ss:$56 sps:$4 sm:$0xff]  }
  0xe7   : > { %764 = vmatprep.subr.bf16.mxu1 %v3823_v47  ;;  %1043 = vmatprep.subr.bf16.mxu0 %v3957_v17 }
  0xe9   : > { %518 = vmatmul.mubr.bf16.vlgmr.msra.gmra.mrb[0].mxu0 %v3771_v30  ;;  %756 = vmatmul.mubr.bf16.vlgmr.msra.gmra.mrb[4].mxu1 %v3798_v39  ;;  %v4069_v30 = vld [vmem:[#allocation5 + $0x5c0] ss:$56 sps:$4 sm:$0xff]  }
  0xea   : > { %765 = vmatpush1.bf16.msra.mxu1 %v3829_v49  ;;  %1044 = vmatpush1.bf16.msra.mxu0 %v3961_v18 }
  0xeb   : > { %766 = vmatprep.subr.bf16.mxu1 %v3833_v50  ;;  %1045 = vmatprep.subr.bf16.mxu0 %v3965_v19 }
  0xec   : > { %796 = vmatprep.mubr.bf16.mxu1 %v3760_v27  ;;  %1075 = vmatprep.mubr.bf16.mxu0 %v3748_v22  ;;  %v4065_v22 = vld [vmem:[#allocation5 + $0x5c4] ss:$56 sps:$4 sm:$0xff]  }
  0xee   : > { %767 = vmatpush1.bf16.msra.mxu1 %v3835_v51  ;;  %1046 = vmatpush1.bf16.msra.mxu0 %v3971_v20 }
  0xef   : > { %768 = vmatprep.subr.bf16.mxu1 %v3839_v52  ;;  %1047 = vmatprep.subr.bf16.mxu0 %v3975_v21 }
  0xf2   : > { %769 = vmatpush1.bf16.msra.mxu1 %v3845_v53  ;;  %1048 = vmatpush1.bf16.msra.mxu0 %v3981_v23 }
  0xf3   : > { %770 = vmatprep.subr.bf16.mxu1 %v3849_v54  ;;  %1049 = vmatprep.subr.bf16.mxu0 %v3985_v24 }
  0xf6   : > { %771 = vmatpush1.bf16.msra.mxu1 %v3855_v55  ;;  %1050 = vmatpush1.bf16.msra.mxu0 %v3989_v25 }
  0xf7   : > { %772 = vmatprep.subr.bf16.mxu1 %v3857_v56  ;;  %1051 = vmatprep.subr.bf16.mxu0 %v3993_v26 }
  0xfa   : > { %773 = vmatpush1.bf16.msra.mxu1 %v3863_v57  ;;  %1052 = vmatpush1.bf16.msra.mxu0 %v3997_v28 }
  0xfb   : > { %774 = vmatprep.subr.bf16.mxu1 %v3865_v58  ;;  %1053 = vmatprep.subr.bf16.mxu0 %v4001_v29 }
  0xfe   : > { %775 = vmatpush1.bf16.msra.mxu1 %v3871_v59  ;;  %1054 = vmatpush1.bf16.msra.mxu0 %v4005_v31 }
  0xff   : > { %776 = vmatprep.subr.bf16.mxu1 %v3873_v60  ;;  %1055 = vmatprep.subr.bf16.mxu0 %v4009_v32 }
 0x102   : > { %777 = vmatpush1.bf16.msra.mxu1 %v3879_v61  ;;  %1056 = vmatpush1.bf16.msra.mxu0 %v4013_v33 }
 0x103   : > { %778 = vmatprep.subr.bf16.mxu1 %v3881_v62  ;;  %1057 = vmatprep.subr.bf16.mxu0 %v4017_v34 }
 0x106   : > { %779 = vmatpush1.bf16.msra.mxu1 %v3887_v63  ;;  %1058 = vmatpush1.bf16.msra.mxu0 %v4021_v35 }
 0x107   : > { %780 = vmatprep.subr.bf16.mxu1 %v3889_v0  ;;  %1059 = vmatprep.subr.bf16.mxu0 %v4025_v36 }
 0x10a   : > { %781 = vmatpush1.bf16.msra.mxu1 %v3895_v1  ;;  %1060 = vmatpush1.bf16.msra.mxu0 %v4029_v37 }
 0x10b   : > { %782 = vmatprep.subr.bf16.mxu1 %v3897_v2  ;;  %1061 = vmatprep.subr.bf16.mxu0 %v4033_v38 }
 0x10e   : > { %783 = vmatpush1.bf16.msra.mxu1 %v3903_v3  ;;  %1062 = vmatpush1.bf16.msra.mxu0 %v4037_v40 }
 0x10f   : > { %784 = vmatprep.subr.bf16.mxu1 %v3905_v4  ;;  %1063 = vmatprep.subr.bf16.mxu0 %v4041_v41 }
 0x112   : > { %785 = vmatpush1.bf16.msra.mxu1 %v3911_v5  ;;  %1064 = vmatpush1.bf16.msra.mxu0 %v4045_v42 }
 0x113   : > { %786 = vmatprep.subr.bf16.mxu1 %v3913_v6  ;;  %1065 = vmatprep.subr.bf16.mxu0 %v4049_v43 }
 0x116   : > { %787 = vmatpush1.bf16.msra.mxu1 %v3921_v7  ;;  %1066 = vmatpush1.bf16.msra.mxu0 %v4053_v44  ;;  %v4073_v7 = vld [vmem:[#allocation5 + $0x634] ss:$56 sps:$4 sm:$0xff]  }
 0x117   : > { %788 = vmatprep.subr.bf16.mxu1 %v3925_v8  ;;  %1067 = vmatprep.subr.bf16.mxu0 %v4057_v45  ;;  %v4077_v8 = vld [vmem:[#allocation5 + $0x630] ss:$56 sps:$4 sm:$0xff]  }
 0x11a   : > { %789 = vmatpush1.bf16.msra.mxu1 %v3929_v9  ;;  %1068 = vmatpush1.bf16.msra.mxu0 %v4061_v46  ;;  %v4081_v9 = vld [vmem:[#allocation5 + $0x6a4] ss:$56 sps:$4 sm:$0xff]  }
 0x11b   : > { %790 = vmatprep.subr.bf16.mxu1 %v3933_v10  ;;  %1069 = vmatprep.subr.bf16.mxu0 %v4065_v22  ;;  %v4085_v10 = vld [vmem:[#allocation5 + $0x6a0] ss:$56 sps:$4 sm:$0xff]  }
 0x11e   : > { %791 = vmatpush1.bf16.msra.mxu1 %v3937_v11  ;;  %1070 = vmatpush1.bf16.msra.mxu0 %v4069_v30 }
 0x11f   : > { %792 = vmatprep.subr.bf16.mxu1 %v3941_v12  ;;  %1071 = vmatprep.subr.bf16.mxu0 %v4073_v7 }
 0x122   : > { %793 = vmatpush1.bf16.msra.mxu1 %v3945_v13  ;;  %1072 = vmatpush1.bf16.msra.mxu0 %v4077_v8 }
 0x123   : > { %794 = vmatprep.subr.bf16.mxu1 %v3949_v14  ;;  %1073 = vmatprep.subr.bf16.mxu0 %v4081_v9 }
 0x126   : > { %795 = vmatpush1.bf16.msra.mxu1 %v3953_v16  ;;  %1074 = vmatpush1.bf16.msra.mxu0 %v4085_v10 }
 0x127   : > { %805 = vmatprep.subr.bf16.mxu1 %v3823_v47  ;;  %1084 = vmatprep.subr.bf16.mxu0 %v3957_v17  ;;  %v4994_v47 = vld [vmem:[#allocation16_spill] sm:$0xff] }
 0x129   : > { %797 = vmatmul.mubr.bf16.vlgmr.msra.gmra.mrb[4].mxu1 %v3825_v48  ;;  %1076 = vmatmul.mubr.bf16.vlgmr.msra.gmra.mrb[4].mxu0 %v3798_v39 }
 0x12a   : > { %806 = vmatpush1.bf16.msra.mxu1 %v3829_v49  ;;  %1085 = vmatpush1.bf16.msra.mxu0 %v3961_v18  ;;  %v4995_v49 = vld [vmem:[#allocation17_spill] sm:$0xff] }
 0x12b   : > { %807 = vmatprep.subr.bf16.mxu1 %v3833_v50  ;;  %1086 = vmatprep.subr.bf16.mxu0 %v3965_v19  ;;  %v4996_v50 = vld [vmem:[#allocation18_spill] sm:$0xff] }
 0x12c   : > { %837 = vmatprep.mubr.bf16.mxu1 %v3729_v15  ;;  %1116 = vmatprep.mubr.bf16.mxu0 %v3760_v27 }
 0x12e   : > { %808 = vmatpush1.bf16.msra.mxu1 %v3835_v51  ;;  %1087 = vmatpush1.bf16.msra.mxu0 %v3971_v20  ;;  %v4997_v51 = vld [vmem:[#allocation19_spill] sm:$0xff] }
 0x12f   : > { %809 = vmatprep.subr.bf16.mxu1 %v3839_v52  ;;  %1088 = vmatprep.subr.bf16.mxu0 %v3975_v21  ;;  %v4157_v52 = vld [vmem:[#allocation5 + $0x1c] ss:$56 sps:$4 sm:$0xff]  }
 0x132   : > { %810 = vmatpush1.bf16.msra.mxu1 %v3845_v53  ;;  %1089 = vmatpush1.bf16.msra.mxu0 %v3981_v23  ;;  %v4161_v53 = vld [vmem:[#allocation5 + $0x18] ss:$56 sps:$4 sm:$0xff]  }
 0x133   : > { %811 = vmatprep.subr.bf16.mxu1 %v3849_v54  ;;  %1090 = vmatprep.subr.bf16.mxu0 %v3985_v24  ;;  %v4165_v54 = vld [vmem:[#allocation5 + $0x8c] ss:$56 sps:$4 sm:$0xff]  }
 0x136   : > { %812 = vmatpush1.bf16.msra.mxu1 %v3855_v55  ;;  %1091 = vmatpush1.bf16.msra.mxu0 %v3989_v25  ;;  %v4998_v55 = vld [vmem:[#allocation15_spill] sm:$0xff] }
 0x137   : > { %813 = vmatprep.subr.bf16.mxu1 %v3857_v56  ;;  %1092 = vmatprep.subr.bf16.mxu0 %v3993_v26  ;;  %v4171_v56 = vld [vmem:[#allocation5 + $0x88] ss:$56 sps:$4 sm:$0xff]  }
 0x13a   : > { %814 = vmatpush1.bf16.msra.mxu1 %v3863_v57  ;;  %1093 = vmatpush1.bf16.msra.mxu0 %v3997_v28  ;;  %v4175_v57 = vld [vmem:[#allocation5 + $0xfc] ss:$56 sps:$4 sm:$0xff]  }
 0x13b   : > { %815 = vmatprep.subr.bf16.mxu1 %v3865_v58  ;;  %1094 = vmatprep.subr.bf16.mxu0 %v4001_v29  ;;  %v4999_v58 = vld [vmem:[#allocation14_spill] sm:$0xff] }
 0x13e   : > { %816 = vmatpush1.bf16.msra.mxu1 %v3871_v59  ;;  %1095 = vmatpush1.bf16.msra.mxu0 %v4005_v31  ;;  %v4181_v59 = vld [vmem:[#allocation5 + $0xf8] ss:$56 sps:$4 sm:$0xff]  }
 0x13f   : > { %817 = vmatprep.subr.bf16.mxu1 %v3873_v60  ;;  %1096 = vmatprep.subr.bf16.mxu0 %v4009_v32  ;;  %v4185_v60 = vld [vmem:[#allocation5 + $0x16c] ss:$56 sps:$4 sm:$0xff]  }
 0x142   : > { %818 = vmatpush1.bf16.msra.mxu1 %v3879_v61  ;;  %1097 = vmatpush1.bf16.msra.mxu0 %v4013_v33  ;;  %v4189_v61 = vld [vmem:[#allocation5 + $0x168] ss:$56 sps:$4 sm:$0xff]  }
 0x143   : > { %819 = vmatprep.subr.bf16.mxu1 %v3881_v62  ;;  %1098 = vmatprep.subr.bf16.mxu0 %v4017_v34  ;;  %v4193_v62 = vld [vmem:[#allocation5 + $0x1dc] ss:$56 sps:$4 sm:$0xff]  }
 0x146   : > { %820 = vmatpush1.bf16.msra.mxu1 %v3887_v63  ;;  %1099 = vmatpush1.bf16.msra.mxu0 %v4021_v35  ;;  %v4197_v63 = vld [vmem:[#allocation5 + $0x1d8] ss:$56 sps:$4 sm:$0xff]  }
 0x147   : > { %821 = vmatprep.subr.bf16.mxu1 %v3889_v0  ;;  %1100 = vmatprep.subr.bf16.mxu0 %v4025_v36  ;;  %v4201_v0 = vld [vmem:[#allocation5 + $0x24c] ss:$56 sps:$4 sm:$0xff]  }
 0x14a   : > { %822 = vmatpush1.bf16.msra.mxu1 %v3895_v1  ;;  %1101 = vmatpush1.bf16.msra.mxu0 %v4029_v37  ;;  %v4205_v1 = vld [vmem:[#allocation5 + $0x248] ss:$56 sps:$4 sm:$0xff]  }
 0x14b   : > { %823 = vmatprep.subr.bf16.mxu1 %v3897_v2  ;;  %1102 = vmatprep.subr.bf16.mxu0 %v4033_v38  ;;  %v4209_v2 = vld [vmem:[#allocation5 + $0x2bc] ss:$56 sps:$4 sm:$0xff]  }
 0x14e   : > { %824 = vmatpush1.bf16.msra.mxu1 %v3903_v3  ;;  %1103 = vmatpush1.bf16.msra.mxu0 %v4037_v40 }
 0x14f   : > { %825 = vmatprep.subr.bf16.mxu1 %v3905_v4  ;;  %1104 = vmatprep.subr.bf16.mxu0 %v4041_v41 }
 0x152   : > { %826 = vmatpush1.bf16.msra.mxu1 %v3911_v5  ;;  %1105 = vmatpush1.bf16.msra.mxu0 %v4045_v42  ;;  %v4217_v5 = vld [vmem:[#allocation5 + $0x2b8] ss:$56 sps:$4 sm:$0xff]  }
 0x153   : > { %827 = vmatprep.subr.bf16.mxu1 %v3913_v6  ;;  %1106 = vmatprep.subr.bf16.mxu0 %v4049_v43 }
 0x156   : > { %828 = vmatpush1.bf16.msra.mxu1 %v4994_v47  ;;  %1107 = vmatpush1.bf16.msra.mxu0 %v4053_v44  ;;  %v4351_v47 = vld [vmem:[#allocation5 + $0x2c0] ss:$56 sps:$4 sm:$0xff]  }
 0x157   : > { %829 = vmatprep.subr.bf16.mxu1 %v4995_v49  ;;  %1108 = vmatprep.subr.bf16.mxu0 %v4057_v45 }
 0x15a   : > { %830 = vmatpush1.bf16.msra.mxu1 %v4996_v50  ;;  %1109 = vmatpush1.bf16.msra.mxu0 %v4061_v46  ;;  %v4356_v50 = vld [vmem:[#allocation5 + $0x334] ss:$56 sps:$4 sm:$0xff]  }
 0x15b   : > { %831 = vmatprep.subr.bf16.mxu1 %v4997_v51  ;;  %1110 = vmatprep.subr.bf16.mxu0 %v4065_v22  ;;  %v4361_v51 = vld [vmem:[#allocation5 + $0x330] ss:$56 sps:$4 sm:$0xff]  }
 0x15e   : > { %832 = vmatpush1.bf16.msra.mxu1 %v3937_v11  ;;  %1111 = vmatpush1.bf16.msra.mxu0 %v4069_v30  ;;  %v4221_v11 = vld [vmem:[#allocation5 + $0x32c] ss:$56 sps:$4 sm:$0xff]  }
 0x15f   : > { %833 = vmatprep.subr.bf16.mxu1 %v3941_v12  ;;  %1112 = vmatprep.subr.bf16.mxu0 %v4073_v7 }
 0x162   : > { %834 = vmatpush1.bf16.msra.mxu1 %v3945_v13  ;;  %1113 = vmatpush1.bf16.msra.mxu0 %v4077_v8  ;;  %v4225_v13 = vld [vmem:[#allocation5 + $0x328] ss:$56 sps:$4 sm:$0xff]  }
 0x163   : > { %835 = vmatprep.subr.bf16.mxu1 %v3949_v14  ;;  %1114 = vmatprep.subr.bf16.mxu0 %v4081_v9  ;;  %v4229_v14 = vld [vmem:[#allocation5 + $0x39c] ss:$56 sps:$4 sm:$0xff]  }
 0x166   : > { %836 = vmatpush1.bf16.msra.mxu1 %v3953_v16  ;;  %1115 = vmatpush1.bf16.msra.mxu0 %v4085_v10  ;;  %v4233_v16 = vld [vmem:[#allocation5 + $0x398] ss:$56 sps:$4 sm:$0xff]  }
 0x167   : > { %1125 = vmatprep.subr.bf16.mxu0 %v3957_v17  ;;  %1363 = vmatprep.subr.bf16.mxu1 %v4157_v52  ;;  %v4237_v17 = vld [vmem:[#allocation5 + $0x40c] ss:$56 sps:$4 sm:$0xff]  }
 0x169   : > { %838 = vmatmul.mubr.bf16.vlgmr.msra.gmra.mrb[4].mxu1 %v4998_v55  ;;  %1117 = vmatmul.mubr.bf16.vlgmr.msra.gmra.mrb[4].mxu0 %v3825_v48 }
 0x16a   : > { %1126 = vmatpush1.bf16.msra.mxu0 %v3961_v18  ;;  %1364 = vmatpush1.bf16.msra.mxu1 %v4161_v53  ;;  %v4241_v18 = vld [vmem:[#allocation5 + $0x408] ss:$56 sps:$4 sm:$0xff]  }
 0x16b   : > { %1127 = vmatprep.subr.bf16.mxu0 %v3965_v19  ;;  %1365 = vmatprep.subr.bf16.mxu1 %v4165_v54  ;;  %v4245_v19 = vld [vmem:[#allocation5 + $0x47c] ss:$56 sps:$4 sm:$0xff]  }
 0x16c   : > { %1157 = vmatprep.mubr.bf16.mxu0 %v3729_v15  ;;  %1395 = vmatprep.mubr.bf16.mxu1 %v4999_v58 }
 0x16e   : > { %1128 = vmatpush1.bf16.msra.mxu0 %v3971_v20  ;;  %1366 = vmatpush1.bf16.msra.mxu1 %v4171_v56  ;;  %v4249_v20 = vld [vmem:[#allocation5 + $0x478] ss:$56 sps:$4 sm:$0xff]  }
 0x16f   : > { %1129 = vmatprep.subr.bf16.mxu0 %v3975_v21  ;;  %1367 = vmatprep.subr.bf16.mxu1 %v4175_v57  ;;  %v4253_v21 = vld [vmem:[#allocation5 + $0x4ec] ss:$56 sps:$4 sm:$0xff]  }
 0x172   : > { %1130 = vmatpush1.bf16.msra.mxu0 %v3981_v23  ;;  %1368 = vmatpush1.bf16.msra.mxu1 %v4181_v59  ;;  %v4257_v23 = vld [vmem:[#allocation5 + $0x4e8] ss:$56 sps:$4 sm:$0xff]  }
 0x173   : > { %1131 = vmatprep.subr.bf16.mxu0 %v3985_v24  ;;  %1369 = vmatprep.subr.bf16.mxu1 %v4185_v60  ;;  %5000 = vst [vmem:[#allocation16_spill] sm:$0xff] %v4257_v23  ;;  %v4261_v24 = vld [vmem:[#allocation5 + $0x55c] ss:$56 sps:$4 sm:$0xff]  }
 0x174   : > { %5001 = vst [vmem:[#allocation17_spill] sm:$0xff] %v4261_v24 }
 0x176   : > { %1132 = vmatpush1.bf16.msra.mxu0 %v3989_v25  ;;  %1370 = vmatpush1.bf16.msra.mxu1 %v4189_v61  ;;  %v4265_v25 = vld [vmem:[#allocation5 + $0x558] ss:$56 sps:$4 sm:$0xff]  }
 0x177   : > { %1133 = vmatprep.subr.bf16.mxu0 %v3993_v26  ;;  %1371 = vmatprep.subr.bf16.mxu1 %v4193_v62  ;;  %5002 = vst [vmem:[#allocation18_spill] sm:$0xff] %v4265_v25  ;;  %v4269_v26 = vld [vmem:[#allocation5 + $0x5cc] ss:$56 sps:$4 sm:$0xff]  }
 0x178   : > { %5003 = vst [vmem:[#allocation19_spill] sm:$0xff] %v4269_v26 }
 0x17a   : > { %1134 = vmatpush1.bf16.msra.mxu0 %v3997_v28  ;;  %1372 = vmatpush1.bf16.msra.mxu1 %v4197_v63  ;;  %v4273_v28 = vld [vmem:[#allocation5 + $0x5c8] ss:$56 sps:$4 sm:$0xff]  }
 0x17b   : > { %1135 = vmatprep.subr.bf16.mxu0 %v4001_v29  ;;  %1373 = vmatprep.subr.bf16.mxu1 %v4201_v0  ;;  %v4277_v29 = vld [vmem:[#allocation5 + $0x63c] ss:$56 sps:$4 sm:$0xff]  }
 0x17c   : > { %v4211_v3 = vpop.f32.mrb[0].mxu1 }
 0x17d   : > { %v4213_v4 = vpop.f32.mrb[1].mxu1 }
 0x17e   : > { %1136 = vmatpush1.bf16.msra.mxu0 %v4005_v31  ;;  %1374 = vmatpush1.bf16.msra.mxu1 %v4205_v1  ;;  %v441_v6 = vpop.f32.mrb[2].mxu1  ;;  %v4281_v31 = vld [vmem:[#allocation5 + $0x638] ss:$56 sps:$4 sm:$0xff]  }
 0x17f   : > { %1137 = vmatprep.subr.bf16.mxu0 %v4009_v32  ;;  %1375 = vmatprep.subr.bf16.mxu1 %v4209_v2  ;;  %v442_v12 = vpop.f32.mrb[3].mxu1  ;;  %v4285_v32 = vld [vmem:[#allocation5 + $0x6ac] ss:$56 sps:$4 sm:$0xff]  }
 0x180   : > { %v4373_v6 = vld [vmem:[#allocation5 + $0x414] ss:$56 sps:$4 sm:$0xff]   ;;  %v4377_v12 = vld [vmem:[#allocation5 + $0x410] ss:$56 sps:$4 sm:$0xff]  }
 0x182   : > { %1138 = vmatpush1.bf16.msra.mxu0 %v4013_v33  ;;  %1376 = vmatpush1.bf16.msra.mxu1 %v4217_v5  ;;  %v4317_v33 = vld [vmem:[#allocation5 + $0x100] ss:$56 sps:$4 sm:$0xff]  }
 0x183   : > { %1139 = vmatprep.subr.bf16.mxu0 %v4017_v34  ;;  %1377 = vmatprep.subr.bf16.mxu1 %v4221_v11  ;;  %v4321_v34 = vld [vmem:[#allocation5 + $0x174] ss:$56 sps:$4 sm:$0xff]  }
 0x186   : > { %1140 = vmatpush1.bf16.msra.mxu0 %v4021_v35  ;;  %1378 = vmatpush1.bf16.msra.mxu1 %v4225_v13  ;;  %v4325_v35 = vld [vmem:[#allocation5 + $0x170] ss:$56 sps:$4 sm:$0xff]  }
 0x187   : > { %1141 = vmatprep.subr.bf16.mxu0 %v4025_v36  ;;  %1379 = vmatprep.subr.bf16.mxu1 %v4229_v14  ;;  %v4329_v36 = vld [vmem:[#allocation5 + $0x1e4] ss:$56 sps:$4 sm:$0xff]  }
 0x18a   : > { %1142 = vmatpush1.bf16.msra.mxu0 %v4029_v37  ;;  %1380 = vmatpush1.bf16.msra.mxu1 %v4233_v16  ;;  %v4333_v37 = vld [vmem:[#allocation5 + $0x1e0] ss:$56 sps:$4 sm:$0xff]  }
 0x18b   : > { %1143 = vmatprep.subr.bf16.mxu0 %v4033_v38  ;;  %1381 = vmatprep.subr.bf16.mxu1 %v4237_v17  ;;  %v4337_v38 = vld [vmem:[#allocation5 + $0x254] ss:$56 sps:$4 sm:$0xff]  }
 0x18e   : > { %1144 = vmatpush1.bf16.msra.mxu0 %v4037_v40  ;;  %1382 = vmatpush1.bf16.msra.mxu1 %v4241_v18  ;;  %v4341_v40 = vld [vmem:[#allocation5 + $0x250] ss:$56 sps:$4 sm:$0xff]  }
 0x18f   : > { %1145 = vmatprep.subr.bf16.mxu0 %v4041_v41  ;;  %1383 = vmatprep.subr.bf16.mxu1 %v4245_v19  ;;  %v4345_v41 = vld [vmem:[#allocation5 + $0x2c4] ss:$56 sps:$4 sm:$0xff]  }
 0x192   : > { %1146 = vmatpush1.bf16.msra.mxu0 %v4045_v42  ;;  %1384 = vmatpush1.bf16.msra.mxu1 %v4249_v20 }
 0x193   : > { %1147 = vmatprep.subr.bf16.mxu0 %v4049_v43  ;;  %1385 = vmatprep.subr.bf16.mxu1 %v4253_v21 }
 0x196   : > { %1148 = vmatpush1.bf16.msra.mxu0 %v4053_v44  ;;  %1386 = vmatpush1.bf16.msra.mxu1 %v4257_v23 }
 0x197   : > { %1149 = vmatprep.subr.bf16.mxu0 %v4057_v45  ;;  %1387 = vmatprep.subr.bf16.mxu1 %v4261_v24 }
 0x19a   : > { %1150 = vmatpush1.bf16.msra.mxu0 %v4061_v46  ;;  %1388 = vmatpush1.bf16.msra.mxu1 %v4265_v25 }
 0x19b   : > { %1151 = vmatprep.subr.bf16.mxu0 %v4065_v22  ;;  %1389 = vmatprep.subr.bf16.mxu1 %v4269_v26  ;;  %v4289_v22 = vld [vmem:[#allocation5 + $0x6a8] ss:$56 sps:$4 sm:$0xff]  }
 0x19e   : > { %1152 = vmatpush1.bf16.msra.mxu0 %v4069_v30  ;;  %1390 = vmatpush1.bf16.msra.mxu1 %v4273_v28  ;;  %v4293_v30 = vld [vmem:[#allocation5 + $0x24] ss:$56 sps:$4 sm:$0xff]  }
 0x19f   : > { %1153 = vmatprep.subr.bf16.mxu0 %v4073_v7  ;;  %1391 = vmatprep.subr.bf16.mxu1 %v4277_v29  ;;  %v4297_v7 = vld [vmem:[#allocation5 + $0x20] ss:$56 sps:$4 sm:$0xff]  }
 0x1a2   : > { %1154 = vmatpush1.bf16.msra.mxu0 %v4077_v8  ;;  %1392 = vmatpush1.bf16.msra.mxu1 %v4281_v31  ;;  %v4301_v8 = vld [vmem:[#allocation5 + $0x94] ss:$56 sps:$4 sm:$0xff]  }
 0x1a3   : > { %1155 = vmatprep.subr.bf16.mxu0 %v4081_v9  ;;  %1393 = vmatprep.subr.bf16.mxu1 %v4285_v32  ;;  %v4307_v9 = vld [vmem:[#allocation5 + $0x90] ss:$56 sps:$4 sm:$0xff]  }
 0x1a6   : > { %1156 = vmatpush1.bf16.msra.mxu0 %v4085_v10  ;;  %1394 = vmatpush1.bf16.msra.mxu1 %v4289_v22  ;;  %v4311_v10 = vld [vmem:[#allocation5 + $0x104] ss:$56 sps:$4 sm:$0xff]  }
 0x1a7   : > { %1404 = vmatprep.subr.bf16.mxu1 %v4157_v52  ;;  %1683 = vmatprep.subr.bf16.mxu0 %v4293_v30 }
 0x1a9   : > { %1158 = vmatmul.mubr.bf16.vlgmr.msra.gmra.mrb[4].mxu0 %v4998_v55  ;;  %1396 = vmatmul.mubr.bf16.vlgmr.msra.gmra.mrb[8].mxu1 %v3798_v39  ;;  %v4409_v55 = vld [vmem:[#allocation5 + $0x5d0] ss:$56 sps:$4 sm:$0xff]  }
 0x1aa   : > { %1405 = vmatpush1.bf16.msra.mxu1 %v4161_v53  ;;  %1684 = vmatpush1.bf16.msra.mxu0 %v4297_v7 }
 0x1ab   : > { %1406 = vmatprep.subr.bf16.mxu1 %v4165_v54  ;;  %1685 = vmatprep.subr.bf16.mxu0 %v4301_v8 }
 0x1ac   : > { %1436 = vmatprep.mubr.bf16.mxu1 %v3760_v27  ;;  %1715 = vmatprep.mubr.bf16.mxu0 %v4999_v58  ;;  %v4405_v58 = vld [vmem:[#allocation5 + $0x5d4] ss:$56 sps:$4 sm:$0xff]  }
 0x1ae   : > { %1407 = vmatpush1.bf16.msra.mxu1 %v4171_v56  ;;  %1686 = vmatpush1.bf16.msra.mxu0 %v4307_v9 }
 0x1af   : > { %1408 = vmatprep.subr.bf16.mxu1 %v4175_v57  ;;  %1687 = vmatprep.subr.bf16.mxu0 %v4311_v10 }
 0x1b2   : > { %1409 = vmatpush1.bf16.msra.mxu1 %v4181_v59  ;;  %1688 = vmatpush1.bf16.msra.mxu0 %v4317_v33 }
 0x1b3   : > { %1410 = vmatprep.subr.bf16.mxu1 %v4185_v60  ;;  %1689 = vmatprep.subr.bf16.mxu0 %v4321_v34 }
 0x1b6   : > { %1411 = vmatpush1.bf16.msra.mxu1 %v4189_v61  ;;  %1690 = vmatpush1.bf16.msra.mxu0 %v4325_v35 }
 0x1b7   : > { %1412 = vmatprep.subr.bf16.mxu1 %v4193_v62  ;;  %1691 = vmatprep.subr.bf16.mxu0 %v4329_v36 }
 0x1ba   : > { %1413 = vmatpush1.bf16.msra.mxu1 %v4197_v63  ;;  %1692 = vmatpush1.bf16.msra.mxu0 %v4333_v37 }
 0x1bb   : > { %1414 = vmatprep.subr.bf16.mxu1 %v4201_v0  ;;  %1693 = vmatprep.subr.bf16.mxu0 %v4337_v38 }
 0x1bc   : > { %v519_v42 = vpop.f32.mrb[0].mxu0 }
 0x1bd   : > { %v2824_v43 = vadd.f32 %v519_v42, %v4211_v3  ;;  %v521_v44 = vpop.f32.mrb[1].mxu0  ;;  %v4365_v3 = vld [vmem:[#allocation5 + $0x3a4] ss:$56 sps:$4 sm:$0xff]  }
 0x1be   : > { %v2825_v45 = vadd.f32 %v521_v44, %v4213_v4  ;;  %v523_v46 = vpop.f32.mrb[2].mxu0  ;;  %1415 = vmatpush1.bf16.msra.mxu1 %v4205_v1  ;;  %1694 = vmatpush1.bf16.msra.mxu0 %v4341_v40  ;;  %v4369_v4 = vld [vmem:[#allocation5 + $0x3a0] ss:$56 sps:$4 sm:$0xff]   ;;  %v4381_v42 = vld [vmem:[#allocation5 + $0x484] ss:$56 sps:$4 sm:$0xff]  }
 0x1bf   : > { %2612 = vst [vmem:[%s3726_s21 + $0x10] sm:$0xff] %v2824_v43  ;;  %v524_v49 = vpop.f32.mrb[3].mxu0  ;;  %1416 = vmatprep.subr.bf16.mxu1 %v4209_v2  ;;  %1695 = vmatprep.subr.bf16.mxu0 %v4345_v41  ;;  %v4385_v43 = vld [vmem:[#allocation5 + $0x480] ss:$56 sps:$4 sm:$0xff]   ;;  %v4389_v44 = vld [vmem:[#allocation5 + $0x4f4] ss:$56 sps:$4 sm:$0xff]  }
 0x1c0   : > { %2613 = vst [vmem:[%s3726_s21 + $0x18] sm:$0xff] %v2825_v45  ;;  %v4393_v45 = vld [vmem:[#allocation5 + $0x4f0] ss:$56 sps:$4 sm:$0xff]   ;;  %v4397_v46 = vld [vmem:[#allocation5 + $0x564] ss:$56 sps:$4 sm:$0xff]  }
 0x1c1   : > { %v4401_v49 = vld [vmem:[#allocation5 + $0x560] ss:$56 sps:$4 sm:$0xff]  }
 0x1c2   : > { %1417 = vmatpush1.bf16.msra.mxu1 %v4217_v5  ;;  %1696 = vmatpush1.bf16.msra.mxu0 %v4351_v47 }
 0x1c3   : > { %1418 = vmatprep.subr.bf16.mxu1 %v4221_v11  ;;  %1697 = vmatprep.subr.bf16.mxu0 %v4356_v50 }
 0x1c6   : > { %1419 = vmatpush1.bf16.msra.mxu1 %v4225_v13  ;;  %1698 = vmatpush1.bf16.msra.mxu0 %v4361_v51 }
 0x1c7   : > { %1420 = vmatprep.subr.bf16.mxu1 %v4229_v14  ;;  %1699 = vmatprep.subr.bf16.mxu0 %v4365_v3 }
 0x1ca   : > { %1421 = vmatpush1.bf16.msra.mxu1 %v4233_v16  ;;  %1700 = vmatpush1.bf16.msra.mxu0 %v4369_v4 }
 0x1cb   : > { %1422 = vmatprep.subr.bf16.mxu1 %v4237_v17  ;;  %1701 = vmatprep.subr.bf16.mxu0 %v4373_v6 }
 0x1ce   : > { %1423 = vmatpush1.bf16.msra.mxu1 %v4241_v18  ;;  %1702 = vmatpush1.bf16.msra.mxu0 %v4377_v12 }
 0x1cf   : > { %1424 = vmatprep.subr.bf16.mxu1 %v4245_v19  ;;  %1703 = vmatprep.subr.bf16.mxu0 %v4381_v42 }
 0x1d2   : > { %1425 = vmatpush1.bf16.msra.mxu1 %v4249_v20  ;;  %1704 = vmatpush1.bf16.msra.mxu0 %v4385_v43 }
 0x1d3   : > { %1426 = vmatprep.subr.bf16.mxu1 %v4253_v21  ;;  %1705 = vmatprep.subr.bf16.mxu0 %v4389_v44 }
 0x1d6   : > { %1427 = vmatpush1.bf16.msra.mxu1 %v4257_v23  ;;  %1706 = vmatpush1.bf16.msra.mxu0 %v4393_v45  ;;  %v4413_v23 = vld [vmem:[#allocation5 + $0x644] ss:$56 sps:$4 sm:$0xff]  }
 0x1d7   : > { %1428 = vmatprep.subr.bf16.mxu1 %v4261_v24  ;;  %1707 = vmatprep.subr.bf16.mxu0 %v4397_v46  ;;  %v4417_v24 = vld [vmem:[#allocation5 + $0x640] ss:$56 sps:$4 sm:$0xff]  }
 0x1da   : > { %1429 = vmatpush1.bf16.msra.mxu1 %v4265_v25  ;;  %1708 = vmatpush1.bf16.msra.mxu0 %v4401_v49  ;;  %v4421_v25 = vld [vmem:[#allocation5 + $0x6b4] ss:$56 sps:$4 sm:$0xff]  }
 0x1db   : > { %1430 = vmatprep.subr.bf16.mxu1 %v4269_v26  ;;  %1709 = vmatprep.subr.bf16.mxu0 %v4405_v58  ;;  %v4425_v26 = vld [vmem:[#allocation5 + $0x6b0] ss:$56 sps:$4 sm:$0xff]  }
 0x1de   : > { %1431 = vmatpush1.bf16.msra.mxu1 %v4273_v28  ;;  %1710 = vmatpush1.bf16.msra.mxu0 %v4409_v55 }
 0x1df   : > { %1432 = vmatprep.subr.bf16.mxu1 %v4277_v29  ;;  %1711 = vmatprep.subr.bf16.mxu0 %v4413_v23 }
 0x1e2   : > { %1433 = vmatpush1.bf16.msra.mxu1 %v4281_v31  ;;  %1712 = vmatpush1.bf16.msra.mxu0 %v4417_v24 }
 0x1e3   : > { %1434 = vmatprep.subr.bf16.mxu1 %v4285_v32  ;;  %1713 = vmatprep.subr.bf16.mxu0 %v4421_v25 }
 0x1e6   : > { %1435 = vmatpush1.bf16.msra.mxu1 %v4289_v22  ;;  %1714 = vmatpush1.bf16.msra.mxu0 %v4425_v26 }
 0x1e7   : > { %1445 = vmatprep.subr.bf16.mxu1 %v4157_v52  ;;  %1724 = vmatprep.subr.bf16.mxu0 %v4293_v30  ;;  %v5004_v52 = vld [vmem:[#allocation16_spill] sm:$0xff] }
 0x1e9   : > { %1437 = vmatmul.mubr.bf16.vlgmr.msra.gmra.mrb[8].mxu1 %v3825_v48  ;;  %1716 = vmatmul.mubr.bf16.vlgmr.msra.gmra.mrb[8].mxu0 %v3798_v39 }
 0x1ea   : > { %1446 = vmatpush1.bf16.msra.mxu1 %v4161_v53  ;;  %1725 = vmatpush1.bf16.msra.mxu0 %v4297_v7  ;;  %v5005_v53 = vld [vmem:[#allocation17_spill] sm:$0xff] }
 0x1eb   : > { %1447 = vmatprep.subr.bf16.mxu1 %v4165_v54  ;;  %1726 = vmatprep.subr.bf16.mxu0 %v4301_v8  ;;  %v5006_v54 = vld [vmem:[#allocation18_spill] sm:$0xff] }
 0x1ec   : > { %1477 = vmatprep.mubr.bf16.mxu1 %v3729_v15  ;;  %1756 = vmatprep.mubr.bf16.mxu0 %v3760_v27 }
 0x1ee   : > { %1448 = vmatpush1.bf16.msra.mxu1 %v4171_v56  ;;  %1727 = vmatpush1.bf16.msra.mxu0 %v4307_v9  ;;  %v5007_v56 = vld [vmem:[#allocation19_spill] sm:$0xff] }
 0x1ef   : > { %1449 = vmatprep.subr.bf16.mxu1 %v4175_v57  ;;  %1728 = vmatprep.subr.bf16.mxu0 %v4311_v10  ;;  %v4497_v57 = vld [vmem:[#allocation5 + $0x2c] ss:$56 sps:$4 sm:$0xff]  }
 0x1f2   : > { %1450 = vmatpush1.bf16.msra.mxu1 %v4181_v59  ;;  %1729 = vmatpush1.bf16.msra.mxu0 %v4317_v33  ;;  %v4501_v59 = vld [vmem:[#allocation5 + $0x28] ss:$56 sps:$4 sm:$0xff]  }
 0x1f3   : > { %1451 = vmatprep.subr.bf16.mxu1 %v4185_v60  ;;  %1730 = vmatprep.subr.bf16.mxu0 %v4321_v34  ;;  %v4505_v60 = vld [vmem:[#allocation5 + $0x9c] ss:$56 sps:$4 sm:$0xff]  }
 0x1f6   : > { %1452 = vmatpush1.bf16.msra.mxu1 %v4189_v61  ;;  %1731 = vmatpush1.bf16.msra.mxu0 %v4325_v35  ;;  %v5008_v61 = vld [vmem:[#allocation15_spill] sm:$0xff] }
 0x1f7   : > { %1453 = vmatprep.subr.bf16.mxu1 %v4193_v62  ;;  %1732 = vmatprep.subr.bf16.mxu0 %v4329_v36  ;;  %v4511_v62 = vld [vmem:[#allocation5 + $0x98] ss:$56 sps:$4 sm:$0xff]  }
 0x1fa   : > { %1454 = vmatpush1.bf16.msra.mxu1 %v4197_v63  ;;  %1733 = vmatpush1.bf16.msra.mxu0 %v4333_v37  ;;  %v4515_v63 = vld [vmem:[#allocation5 + $0x10c] ss:$56 sps:$4 sm:$0xff]  }
 0x1fb   : > { %1455 = vmatprep.subr.bf16.mxu1 %v4201_v0  ;;  %1734 = vmatprep.subr.bf16.mxu0 %v4337_v38  ;;  %v5009_v0 = vld [vmem:[#allocation14_spill] sm:$0xff] }
 0x1fe   : > { %1456 = vmatpush1.bf16.msra.mxu1 %v4205_v1  ;;  %1735 = vmatpush1.bf16.msra.mxu0 %v4341_v40  ;;  %v4521_v1 = vld [vmem:[#allocation5 + $0x108] ss:$56 sps:$4 sm:$0xff]  }
 0x1ff   : > { %1457 = vmatprep.subr.bf16.mxu1 %v4209_v2  ;;  %1736 = vmatprep.subr.bf16.mxu0 %v4345_v41  ;;  %v4525_v2 = vld [vmem:[#allocation5 + $0x17c] ss:$56 sps:$4 sm:$0xff]  }
 0x202   : > { %1458 = vmatpush1.bf16.msra.mxu1 %v4217_v5  ;;  %1737 = vmatpush1.bf16.msra.mxu0 %v4351_v47  ;;  %v4529_v5 = vld [vmem:[#allocation5 + $0x178] ss:$56 sps:$4 sm:$0xff]  }
 0x203   : > { %1459 = vmatprep.subr.bf16.mxu1 %v4221_v11  ;;  %1738 = vmatprep.subr.bf16.mxu0 %v4356_v50  ;;  %v4533_v11 = vld [vmem:[#allocation5 + $0x1ec] ss:$56 sps:$4 sm:$0xff]  }
 0x206   : > { %1460 = vmatpush1.bf16.msra.mxu1 %v4225_v13  ;;  %1739 = vmatpush1.bf16.msra.mxu0 %v4361_v51  ;;  %v4537_v13 = vld [vmem:[#allocation5 + $0x1e8] ss:$56 sps:$4 sm:$0xff]  }
 0x207   : > { %1461 = vmatprep.subr.bf16.mxu1 %v4229_v14  ;;  %1740 = vmatprep.subr.bf16.mxu0 %v4365_v3  ;;  %v4541_v14 = vld [vmem:[#allocation5 + $0x25c] ss:$56 sps:$4 sm:$0xff]  }
 0x20a   : > { %1462 = vmatpush1.bf16.msra.mxu1 %v4233_v16  ;;  %1741 = vmatpush1.bf16.msra.mxu0 %v4369_v4  ;;  %v4545_v16 = vld [vmem:[#allocation5 + $0x258] ss:$56 sps:$4 sm:$0xff]  }
 0x20b   : > { %1463 = vmatprep.subr.bf16.mxu1 %v4237_v17  ;;  %1742 = vmatprep.subr.bf16.mxu0 %v4373_v6  ;;  %v4549_v17 = vld [vmem:[#allocation5 + $0x2cc] ss:$56 sps:$4 sm:$0xff]  }
 0x20e   : > { %1464 = vmatpush1.bf16.msra.mxu1 %v4241_v18  ;;  %1743 = vmatpush1.bf16.msra.mxu0 %v4377_v12 }
 0x20f   : > { %1465 = vmatprep.subr.bf16.mxu1 %v4245_v19  ;;  %1744 = vmatprep.subr.bf16.mxu0 %v4381_v42 }
 0x212   : > { %1466 = vmatpush1.bf16.msra.mxu1 %v4249_v20  ;;  %1745 = vmatpush1.bf16.msra.mxu0 %v4385_v43 }
 0x213   : > { %1467 = vmatprep.subr.bf16.mxu1 %v4253_v21  ;;  %1746 = vmatprep.subr.bf16.mxu0 %v4389_v44  ;;  %v4555_v21 = vld [vmem:[#allocation5 + $0x2c8] ss:$56 sps:$4 sm:$0xff]  }
 0x216   : > { %1468 = vmatpush1.bf16.msra.mxu1 %v5004_v52  ;;  %1747 = vmatpush1.bf16.msra.mxu0 %v4393_v45  ;;  %v4693_v52 = vld [vmem:[#allocation5 + $0x344] ss:$56 sps:$4 sm:$0xff]  }
 0x217   : > { %1469 = vmatprep.subr.bf16.mxu1 %v5005_v53  ;;  %1748 = vmatprep.subr.bf16.mxu0 %v4397_v46  ;;  %v4697_v53 = vld [vmem:[#allocation5 + $0x340] ss:$56 sps:$4 sm:$0xff]  }
 0x21a   : > { %1470 = vmatpush1.bf16.msra.mxu1 %v5006_v54  ;;  %1749 = vmatpush1.bf16.msra.mxu0 %v4401_v49  ;;  %v4701_v54 = vld [vmem:[#allocation5 + $0x3b4] ss:$56 sps:$4 sm:$0xff]  }
 0x21b   : > { %1471 = vmatprep.subr.bf16.mxu1 %v5007_v56  ;;  %1750 = vmatprep.subr.bf16.mxu0 %v4405_v58  ;;  %v4705_v56 = vld [vmem:[#allocation5 + $0x3b0] ss:$56 sps:$4 sm:$0xff]  }
 0x21e   : > { %1472 = vmatpush1.bf16.msra.mxu1 %v4273_v28  ;;  %1751 = vmatpush1.bf16.msra.mxu0 %v4409_v55 }
 0x21f   : > { %1473 = vmatprep.subr.bf16.mxu1 %v4277_v29  ;;  %1752 = vmatprep.subr.bf16.mxu0 %v4413_v23  ;;  %v4559_v29 = vld [vmem:[#allocation5 + $0x33c] ss:$56 sps:$4 sm:$0xff]  }
 0x222   : > { %1474 = vmatpush1.bf16.msra.mxu1 %v4281_v31  ;;  %1753 = vmatpush1.bf16.msra.mxu0 %v4417_v24  ;;  %v4563_v31 = vld [vmem:[#allocation5 + $0x338] ss:$56 sps:$4 sm:$0xff]  }
 0x223   : > { %1475 = vmatprep.subr.bf16.mxu1 %v4285_v32  ;;  %1754 = vmatprep.subr.bf16.mxu0 %v4421_v25  ;;  %v4567_v32 = vld [vmem:[#allocation5 + $0x3ac] ss:$56 sps:$4 sm:$0xff]  }
 0x226   : > { %1476 = vmatpush1.bf16.msra.mxu1 %v4289_v22  ;;  %1755 = vmatpush1.bf16.msra.mxu0 %v4425_v26  ;;  %v4571_v22 = vld [vmem:[#allocation5 + $0x3a8] ss:$56 sps:$4 sm:$0xff]  }
 0x227   : > { %1765 = vmatprep.subr.bf16.mxu0 %v4293_v30  ;;  %2003 = vmatprep.subr.bf16.mxu1 %v4497_v57  ;;  %v4575_v30 = vld [vmem:[#allocation5 + $0x41c] ss:$56 sps:$4 sm:$0xff]  }
 0x229   : > { %1478 = vmatmul.mubr.bf16.vlgmr.msra.gmra.mrb[8].mxu1 %v5008_v61  ;;  %1757 = vmatmul.mubr.bf16.vlgmr.msra.gmra.mrb[8].mxu0 %v3825_v48 }
 0x22a   : > { %1766 = vmatpush1.bf16.msra.mxu0 %v4297_v7  ;;  %2004 = vmatpush1.bf16.msra.mxu1 %v4501_v59  ;;  %v4579_v7 = vld [vmem:[#allocation5 + $0x418] ss:$56 sps:$4 sm:$0xff]  }
 0x22b   : > { %1767 = vmatprep.subr.bf16.mxu0 %v4301_v8  ;;  %2005 = vmatprep.subr.bf16.mxu1 %v4505_v60  ;;  %v4583_v8 = vld [vmem:[#allocation5 + $0x48c] ss:$56 sps:$4 sm:$0xff]  }
 0x22c   : > { %1797 = vmatprep.mubr.bf16.mxu0 %v3729_v15  ;;  %2035 = vmatprep.mubr.bf16.mxu1 %v5009_v0 }
 0x22e   : > { %1768 = vmatpush1.bf16.msra.mxu0 %v4307_v9  ;;  %2006 = vmatpush1.bf16.msra.mxu1 %v4511_v62  ;;  %v4587_v9 = vld [vmem:[#allocation5 + $0x488] ss:$56 sps:$4 sm:$0xff]  }
 0x22f   : > { %1769 = vmatprep.subr.bf16.mxu0 %v4311_v10  ;;  %2007 = vmatprep.subr.bf16.mxu1 %v4515_v63  ;;  %v4591_v10 = vld [vmem:[#allocation5 + $0x4fc] ss:$56 sps:$4 sm:$0xff]  }
 0x232   : > { %1770 = vmatpush1.bf16.msra.mxu0 %v4317_v33  ;;  %2008 = vmatpush1.bf16.msra.mxu1 %v4521_v1  ;;  %v4595_v33 = vld [vmem:[#allocation5 + $0x4f8] ss:$56 sps:$4 sm:$0xff]  }
 0x233   : > { %1771 = vmatprep.subr.bf16.mxu0 %v4321_v34  ;;  %2009 = vmatprep.subr.bf16.mxu1 %v4525_v2  ;;  %5010 = vst [vmem:[#allocation16_spill] sm:$0xff] %v4595_v33  ;;  %v4599_v34 = vld [vmem:[#allocation5 + $0x56c] ss:$56 sps:$4 sm:$0xff]  }
 0x234   : > { %5011 = vst [vmem:[#allocation17_spill] sm:$0xff] %v4599_v34 }
 0x236   : > { %1772 = vmatpush1.bf16.msra.mxu0 %v4325_v35  ;;  %2010 = vmatpush1.bf16.msra.mxu1 %v4529_v5  ;;  %v4603_v35 = vld [vmem:[#allocation5 + $0x568] ss:$56 sps:$4 sm:$0xff]  }
 0x237   : > { %1773 = vmatprep.subr.bf16.mxu0 %v4329_v36  ;;  %2011 = vmatprep.subr.bf16.mxu1 %v4533_v11  ;;  %5012 = vst [vmem:[#allocation18_spill] sm:$0xff] %v4603_v35  ;;  %v4607_v36 = vld [vmem:[#allocation5 + $0x5dc] ss:$56 sps:$4 sm:$0xff]  }
 0x238   : > { %5013 = vst [vmem:[#allocation19_spill] sm:$0xff] %v4607_v36 }
 0x23a   : > { %1774 = vmatpush1.bf16.msra.mxu0 %v4333_v37  ;;  %2012 = vmatpush1.bf16.msra.mxu1 %v4537_v13  ;;  %v4611_v37 = vld [vmem:[#allocation5 + $0x5d8] ss:$56 sps:$4 sm:$0xff]  }
 0x23b   : > { %1775 = vmatprep.subr.bf16.mxu0 %v4337_v38  ;;  %2013 = vmatprep.subr.bf16.mxu1 %v4541_v14  ;;  %v4615_v38 = vld [vmem:[#allocation5 + $0x64c] ss:$56 sps:$4 sm:$0xff]  }
 0x23c   : > { %v839_v18 = vpop.f32.mrb[4].mxu1 }
 0x23d   : > { %2646 = vst [vmem:[%s3726_s21 + $0x20] sm:$0xff] %v839_v18  ;;  %v841_v19 = vpop.f32.mrb[5].mxu1  ;;  %v4713_v18 = vld [vmem:[#allocation5 + $0x420] ss:$56 sps:$4 sm:$0xff]  }
 0x23e   : > { %2647 = vst [vmem:[%s3726_s21 + $0x28] sm:$0xff] %v841_v19  ;;  %v843_v20 = vpop.f32.mrb[6].mxu1  ;;  %1776 = vmatpush1.bf16.msra.mxu0 %v4341_v40  ;;  %2014 = vmatpush1.bf16.msra.mxu1 %v4545_v16  ;;  %v4619_v40 = vld [vmem:[#allocation5 + $0x648] ss:$56 sps:$4 sm:$0xff]   ;;  %v4717_v19 = vld [vmem:[#allocation5 + $0x494] ss:$56 sps:$4 sm:$0xff]  }
 0x23f   : > { %v844_v28 = vpop.f32.mrb[7].mxu1  ;;  %1777 = vmatprep.subr.bf16.mxu0 %v4345_v41  ;;  %2015 = vmatprep.subr.bf16.mxu1 %v4549_v17  ;;  %v4623_v41 = vld [vmem:[#allocation5 + $0x6bc] ss:$56 sps:$4 sm:$0xff]   ;;  %v4721_v20 = vld [vmem:[#allocation5 + $0x490] ss:$56 sps:$4 sm:$0xff]  }
 0x240   : > { %v4725_v28 = vld [vmem:[#allocation5 + $0x504] ss:$56 sps:$4 sm:$0xff]  }
 0x242   : > { %1778 = vmatpush1.bf16.msra.mxu0 %v4351_v47  ;;  %2016 = vmatpush1.bf16.msra.mxu1 %v4555_v21  ;;  %v4655_v47 = vld [vmem:[#allocation5 + $0x110] ss:$56 sps:$4 sm:$0xff]  }
 0x243   : > { %1779 = vmatprep.subr.bf16.mxu0 %v4356_v50  ;;  %2017 = vmatprep.subr.bf16.mxu1 %v4559_v29  ;;  %v4659_v50 = vld [vmem:[#allocation5 + $0x184] ss:$56 sps:$4 sm:$0xff]  }
 0x246   : > { %1780 = vmatpush1.bf16.msra.mxu0 %v4361_v51  ;;  %2018 = vmatpush1.bf16.msra.mxu1 %v4563_v31  ;;  %v4663_v51 = vld [vmem:[#allocation5 + $0x180] ss:$56 sps:$4 sm:$0xff]  }
 0x247   : > { %1781 = vmatprep.subr.bf16.mxu0 %v4365_v3  ;;  %2019 = vmatprep.subr.bf16.mxu1 %v4567_v32  ;;  %v4667_v3 = vld [vmem:[#allocation5 + $0x1f4] ss:$56 sps:$4 sm:$0xff]  }
 0x24a   : > { %1782 = vmatpush1.bf16.msra.mxu0 %v4369_v4  ;;  %2020 = vmatpush1.bf16.msra.mxu1 %v4571_v22  ;;  %v4671_v4 = vld [vmem:[#allocation5 + $0x1f0] ss:$56 sps:$4 sm:$0xff]  }
 0x24b   : > { %1783 = vmatprep.subr.bf16.mxu0 %v4373_v6  ;;  %2021 = vmatprep.subr.bf16.mxu1 %v4575_v30  ;;  %v4675_v6 = vld [vmem:[#allocation5 + $0x264] ss:$56 sps:$4 sm:$0xff]  }
 0x24e   : > { %1784 = vmatpush1.bf16.msra.mxu0 %v4377_v12  ;;  %2022 = vmatpush1.bf16.msra.mxu1 %v4579_v7  ;;  %v4679_v12 = vld [vmem:[#allocation5 + $0x260] ss:$56 sps:$4 sm:$0xff]  }
 0x24f   : > { %1785 = vmatprep.subr.bf16.mxu0 %v4381_v42  ;;  %2023 = vmatprep.subr.bf16.mxu1 %v4583_v8  ;;  %v4683_v42 = vld [vmem:[#allocation5 + $0x2d4] ss:$56 sps:$4 sm:$0xff]  }
 0x252   : > { %1786 = vmatpush1.bf16.msra.mxu0 %v4385_v43  ;;  %2024 = vmatpush1.bf16.msra.mxu1 %v4587_v9 }
 0x253   : > { %1787 = vmatprep.subr.bf16.mxu0 %v4389_v44  ;;  %2025 = vmatprep.subr.bf16.mxu1 %v4591_v10 }
 0x256   : > { %1788 = vmatpush1.bf16.msra.mxu0 %v4393_v45  ;;  %2026 = vmatpush1.bf16.msra.mxu1 %v4595_v33 }
 0x257   : > { %1789 = vmatprep.subr.bf16.mxu0 %v4397_v46  ;;  %2027 = vmatprep.subr.bf16.mxu1 %v4599_v34  ;;  %v4689_v46 = vld [vmem:[#allocation5 + $0x2d0] ss:$56 sps:$4 sm:$0xff]  }
 0x25a   : > { %1790 = vmatpush1.bf16.msra.mxu0 %v4401_v49  ;;  %2028 = vmatpush1.bf16.msra.mxu1 %v4603_v35 }
 0x25b   : > { %1791 = vmatprep.subr.bf16.mxu0 %v4405_v58  ;;  %2029 = vmatprep.subr.bf16.mxu1 %v4607_v36  ;;  %v4627_v58 = vld [vmem:[#allocation5 + $0x6b8] ss:$56 sps:$4 sm:$0xff]  }
 0x25e   : > { %1792 = vmatpush1.bf16.msra.mxu0 %v4409_v55  ;;  %2030 = vmatpush1.bf16.msra.mxu1 %v4611_v37  ;;  %v4631_v55 = vld [vmem:[#allocation5 + $0x34] ss:$56 sps:$4 sm:$0xff]  }
 0x25f   : > { %1793 = vmatprep.subr.bf16.mxu0 %v4413_v23  ;;  %2031 = vmatprep.subr.bf16.mxu1 %v4615_v38  ;;  %v4635_v23 = vld [vmem:[#allocation5 + $0x30] ss:$56 sps:$4 sm:$0xff]  }
 0x262   : > { %1794 = vmatpush1.bf16.msra.mxu0 %v4417_v24  ;;  %2032 = vmatpush1.bf16.msra.mxu1 %v4619_v40  ;;  %v4639_v24 = vld [vmem:[#allocation5 + $0xa4] ss:$56 sps:$4 sm:$0xff]  }
 0x263   : > { %1795 = vmatprep.subr.bf16.mxu0 %v4421_v25  ;;  %2033 = vmatprep.subr.bf16.mxu1 %v4623_v41  ;;  %v4645_v25 = vld [vmem:[#allocation5 + $0xa0] ss:$56 sps:$4 sm:$0xff]  }
 0x266   : > { %1796 = vmatpush1.bf16.msra.mxu0 %v4425_v26  ;;  %2034 = vmatpush1.bf16.msra.mxu1 %v4627_v58  ;;  %v4649_v26 = vld [vmem:[#allocation5 + $0x114] ss:$56 sps:$4 sm:$0xff]  }
 0x267   : > { %2044 = vmatprep.subr.bf16.mxu1 %v4497_v57  ;;  %2323 = vmatprep.subr.bf16.mxu0 %v4631_v55 }
 0x269   : > { %1798 = vmatmul.mubr.bf16.vlgmr.msra.gmra.mrb[8].mxu0 %v5008_v61  ;;  %2036 = vmatmul.mubr.bf16.vlgmr.msra.gmra.mrb[12].mxu1 %v3798_v39  ;;  %v4745_v61 = vld [vmem:[#allocation5 + $0x5e0] ss:$56 sps:$4 sm:$0xff]  }
 0x26a   : > { %2045 = vmatpush1.bf16.msra.mxu1 %v4501_v59  ;;  %2324 = vmatpush1.bf16.msra.mxu0 %v4635_v23 }
 0x26b   : > { %2046 = vmatprep.subr.bf16.mxu1 %v4505_v60  ;;  %2325 = vmatprep.subr.bf16.mxu0 %v4639_v24 }
 0x26c   : > { %2076 = vmatprep.mubr.bf16.mxu1 %v3760_v27  ;;  %2355 = vmatprep.mubr.bf16.mxu0 %v5009_v0  ;;  %v4709_v0 = vld [vmem:[#allocation5 + $0x424] ss:$56 sps:$4 sm:$0xff]  }
 0x26e   : > { %2047 = vmatpush1.bf16.msra.mxu1 %v4511_v62  ;;  %2326 = vmatpush1.bf16.msra.mxu0 %v4645_v25 }
 0x26f   : > { %2048 = vmatprep.subr.bf16.mxu1 %v4515_v63  ;;  %2327 = vmatprep.subr.bf16.mxu0 %v4649_v26 }
 0x272   : > { %2049 = vmatpush1.bf16.msra.mxu1 %v4521_v1  ;;  %2328 = vmatpush1.bf16.msra.mxu0 %v4655_v47 }
 0x273   : > { %2050 = vmatprep.subr.bf16.mxu1 %v4525_v2  ;;  %2329 = vmatprep.subr.bf16.mxu0 %v4659_v50 }
 0x276   : > { %2051 = vmatpush1.bf16.msra.mxu1 %v4529_v5  ;;  %2330 = vmatpush1.bf16.msra.mxu0 %v4663_v51 }
 0x277   : > { %2052 = vmatprep.subr.bf16.mxu1 %v4533_v11  ;;  %2331 = vmatprep.subr.bf16.mxu0 %v4667_v3 }
 0x27a   : > { %2053 = vmatpush1.bf16.msra.mxu1 %v4537_v13  ;;  %2332 = vmatpush1.bf16.msra.mxu0 %v4671_v4 }
 0x27b   : > { %2054 = vmatprep.subr.bf16.mxu1 %v4541_v14  ;;  %2333 = vmatprep.subr.bf16.mxu0 %v4675_v6 }
 0x27c   : > { %v1159_v43 = vpop.f32.mrb[4].mxu0 }
 0x27d   : > { %2680 = vst [vmem:[%s3726_s21 + $0x30] sm:$0xff] %v1159_v43  ;;  %v1161_v44 = vpop.f32.mrb[5].mxu0  ;;  %v4729_v43 = vld [vmem:[#allocation5 + $0x500] ss:$56 sps:$4 sm:$0xff]  }
 0x27e   : > { %2681 = vst [vmem:[%s3726_s21 + $0x38] sm:$0xff] %v1161_v44  ;;  %v1163_v45 = vpop.f32.mrb[6].mxu0  ;;  %2055 = vmatpush1.bf16.msra.mxu1 %v4545_v16  ;;  %2334 = vmatpush1.bf16.msra.mxu0 %v4679_v12  ;;  %v4733_v44 = vld [vmem:[#allocation5 + $0x574] ss:$56 sps:$4 sm:$0xff]  }
 0x27f   : > { %v1164_v49 = vpop.f32.mrb[7].mxu0  ;;  %2056 = vmatprep.subr.bf16.mxu1 %v4549_v17  ;;  %2335 = vmatprep.subr.bf16.mxu0 %v4683_v42  ;;  %v4737_v45 = vld [vmem:[#allocation5 + $0x570] ss:$56 sps:$4 sm:$0xff]  }
 0x280   : > { %v4741_v49 = vld [vmem:[#allocation5 + $0x5e4] ss:$56 sps:$4 sm:$0xff]  }
 0x282   : > { %2057 = vmatpush1.bf16.msra.mxu1 %v4555_v21  ;;  %2336 = vmatpush1.bf16.msra.mxu0 %v4689_v46 }
 0x283   : > { %2058 = vmatprep.subr.bf16.mxu1 %v4559_v29  ;;  %2337 = vmatprep.subr.bf16.mxu0 %v4693_v52 }
 0x286   : > { %2059 = vmatpush1.bf16.msra.mxu1 %v4563_v31  ;;  %2338 = vmatpush1.bf16.msra.mxu0 %v4697_v53 }
 0x287   : > { %2060 = vmatprep.subr.bf16.mxu1 %v4567_v32  ;;  %2339 = vmatprep.subr.bf16.mxu0 %v4701_v54 }
 0x28a   : > { %2061 = vmatpush1.bf16.msra.mxu1 %v4571_v22  ;;  %2340 = vmatpush1.bf16.msra.mxu0 %v4705_v56 }
 0x28b   : > { %2062 = vmatprep.subr.bf16.mxu1 %v4575_v30  ;;  %2341 = vmatprep.subr.bf16.mxu0 %v4709_v0 }
 0x28e   : > { %2063 = vmatpush1.bf16.msra.mxu1 %v4579_v7  ;;  %2342 = vmatpush1.bf16.msra.mxu0 %v4713_v18 }
 0x28f   : > { %2064 = vmatprep.subr.bf16.mxu1 %v4583_v8  ;;  %2343 = vmatprep.subr.bf16.mxu0 %v4717_v19 }
 0x292   : > { %2065 = vmatpush1.bf16.msra.mxu1 %v4587_v9  ;;  %2344 = vmatpush1.bf16.msra.mxu0 %v4721_v20 }
 0x293   : > { %2066 = vmatprep.subr.bf16.mxu1 %v4591_v10  ;;  %2345 = vmatprep.subr.bf16.mxu0 %v4725_v28 }
 0x296   : > { %2067 = vmatpush1.bf16.msra.mxu1 %v4595_v33  ;;  %2346 = vmatpush1.bf16.msra.mxu0 %v4729_v43  ;;  %v4749_v33 = vld [vmem:[#allocation5 + $0x654] ss:$56 sps:$4 sm:$0xff]  }
 0x297   : > { %2068 = vmatprep.subr.bf16.mxu1 %v4599_v34  ;;  %2347 = vmatprep.subr.bf16.mxu0 %v4733_v44  ;;  %v4753_v34 = vld [vmem:[#allocation5 + $0x650] ss:$56 sps:$4 sm:$0xff]  }
 0x29a   : > { %2069 = vmatpush1.bf16.msra.mxu1 %v4603_v35  ;;  %2348 = vmatpush1.bf16.msra.mxu0 %v4737_v45  ;;  %v4757_v35 = vld [vmem:[#allocation5 + $0x6c4] ss:$56 sps:$4 sm:$0xff]  }
 0x29b   : > { %2070 = vmatprep.subr.bf16.mxu1 %v4607_v36  ;;  %2349 = vmatprep.subr.bf16.mxu0 %v4741_v49  ;;  %v4761_v36 = vld [vmem:[#allocation5 + $0x6c0] ss:$56 sps:$4 sm:$0xff]  }
 0x29e   : > { %2071 = vmatpush1.bf16.msra.mxu1 %v4611_v37  ;;  %2350 = vmatpush1.bf16.msra.mxu0 %v4745_v61 }
 0x29f   : > { %2072 = vmatprep.subr.bf16.mxu1 %v4615_v38  ;;  %2351 = vmatprep.subr.bf16.mxu0 %v4749_v33 }
 0x2a2   : > { %2073 = vmatpush1.bf16.msra.mxu1 %v4619_v40  ;;  %2352 = vmatpush1.bf16.msra.mxu0 %v4753_v34 }
 0x2a3   : > { %2074 = vmatprep.subr.bf16.mxu1 %v4623_v41  ;;  %2353 = vmatprep.subr.bf16.mxu0 %v4757_v35 }
 0x2a6   : > { %2075 = vmatpush1.bf16.msra.mxu1 %v4627_v58  ;;  %2354 = vmatpush1.bf16.msra.mxu0 %v4761_v36 }
 0x2a7   : > { %2085 = vmatprep.subr.bf16.mxu1 %v4497_v57  ;;  %2364 = vmatprep.subr.bf16.mxu0 %v4631_v55  ;;  %v5016_v57 = vld [vmem:[#allocation18_spill] sm:$0xff] }
 0x2a9   : > { %2077 = vmatmul.mubr.bf16.vlgmr.msra.gmra.mrb[12].mxu1 %v3825_v48  ;;  %2356 = vmatmul.mubr.bf16.vlgmr.msra.gmra.mrb[12].mxu0 %v3798_v39  ;;  %v5015_v39 = vld [vmem:[#allocation17_spill] sm:$0xff] }
 0x2aa   : > { %2086 = vmatpush1.bf16.msra.mxu1 %v4501_v59  ;;  %2365 = vmatpush1.bf16.msra.mxu0 %v4635_v23  ;;  %v5017_v59 = vld [vmem:[#allocation19_spill] sm:$0xff] }
 0x2ab   : > { %2087 = vmatprep.subr.bf16.mxu1 %v4505_v60  ;;  %2366 = vmatprep.subr.bf16.mxu0 %v4639_v24  ;;  %v5018_v60 = vld [vmem:[#allocation15_spill] sm:$0xff] }
 0x2ac   : > { %2117 = vmatprep.mubr.bf16.mxu1 %v3729_v15  ;;  %2396 = vmatprep.mubr.bf16.mxu0 %v3760_v27  ;;  %v5014_v27 = vld [vmem:[#allocation16_spill] sm:$0xff] }
 0x2ae   : > { %2088 = vmatpush1.bf16.msra.mxu1 %v4511_v62  ;;  %2367 = vmatpush1.bf16.msra.mxu0 %v4645_v25 }
 0x2af   : > { %2089 = vmatprep.subr.bf16.mxu1 %v4515_v63  ;;  %2368 = vmatprep.subr.bf16.mxu0 %v4649_v26 }
 0x2b2   : > { %2090 = vmatpush1.bf16.msra.mxu1 %v4521_v1  ;;  %2369 = vmatpush1.bf16.msra.mxu0 %v4655_v47 }
 0x2b3   : > { %2091 = vmatprep.subr.bf16.mxu1 %v4525_v2  ;;  %2370 = vmatprep.subr.bf16.mxu0 %v4659_v50 }
 0x2b6   : > { %2092 = vmatpush1.bf16.msra.mxu1 %v4529_v5  ;;  %2371 = vmatpush1.bf16.msra.mxu0 %v4663_v51 }
 0x2b7   : > { %2093 = vmatprep.subr.bf16.mxu1 %v4533_v11  ;;  %2372 = vmatprep.subr.bf16.mxu0 %v4667_v3 }
 0x2ba   : > { %2094 = vmatpush1.bf16.msra.mxu1 %v4537_v13  ;;  %2373 = vmatpush1.bf16.msra.mxu0 %v4671_v4 }
 0x2bb   : > { %2095 = vmatprep.subr.bf16.mxu1 %v4541_v14  ;;  %2374 = vmatprep.subr.bf16.mxu0 %v4675_v6 }
 0x2be   : > { %2096 = vmatpush1.bf16.msra.mxu1 %v4545_v16  ;;  %2375 = vmatpush1.bf16.msra.mxu0 %v4679_v12 }
 0x2bf   : > { %2097 = vmatprep.subr.bf16.mxu1 %v4549_v17  ;;  %2376 = vmatprep.subr.bf16.mxu0 %v4683_v42 }
 0x2c2   : > { %2098 = vmatpush1.bf16.msra.mxu1 %v4555_v21  ;;  %2377 = vmatpush1.bf16.msra.mxu0 %v4689_v46 }
 0x2c3   : > { %2099 = vmatprep.subr.bf16.mxu1 %v4559_v29  ;;  %2378 = vmatprep.subr.bf16.mxu0 %v4693_v52 }
 0x2c6   : > { %2100 = vmatpush1.bf16.msra.mxu1 %v4563_v31  ;;  %2379 = vmatpush1.bf16.msra.mxu0 %v4697_v53 }
 0x2c7   : > { %2101 = vmatprep.subr.bf16.mxu1 %v4567_v32  ;;  %2380 = vmatprep.subr.bf16.mxu0 %v4701_v54 }
 0x2ca   : > { %2102 = vmatpush1.bf16.msra.mxu1 %v4571_v22  ;;  %2381 = vmatpush1.bf16.msra.mxu0 %v4705_v56 }
 0x2cb   : > { %2103 = vmatprep.subr.bf16.mxu1 %v4575_v30  ;;  %2382 = vmatprep.subr.bf16.mxu0 %v4709_v0 }
 0x2ce   : > { %2104 = vmatpush1.bf16.msra.mxu1 %v4579_v7  ;;  %2383 = vmatpush1.bf16.msra.mxu0 %v4713_v18 }
 0x2cf   : > { %2105 = vmatprep.subr.bf16.mxu1 %v4583_v8  ;;  %2384 = vmatprep.subr.bf16.mxu0 %v4717_v19 }
 0x2d2   : > { %2106 = vmatpush1.bf16.msra.mxu1 %v4587_v9  ;;  %2385 = vmatpush1.bf16.msra.mxu0 %v4721_v20 }
 0x2d3   : > { %2107 = vmatprep.subr.bf16.mxu1 %v4591_v10  ;;  %2386 = vmatprep.subr.bf16.mxu0 %v4725_v28 }
 0x2d6   : > { %2108 = vmatpush1.bf16.msra.mxu1 %v5014_v27  ;;  %2387 = vmatpush1.bf16.msra.mxu0 %v4729_v43 }
 0x2d7   : > { %2109 = vmatprep.subr.bf16.mxu1 %v5015_v39  ;;  %2388 = vmatprep.subr.bf16.mxu0 %v4733_v44 }
 0x2da   : > { %2110 = vmatpush1.bf16.msra.mxu1 %v5016_v57  ;;  %2389 = vmatpush1.bf16.msra.mxu0 %v4737_v45 }
 0x2db   : > { %2111 = vmatprep.subr.bf16.mxu1 %v5017_v59  ;;  %2390 = vmatprep.subr.bf16.mxu0 %v4741_v49 }
 0x2de   : > { %2112 = vmatpush1.bf16.msra.mxu1 %v4611_v37  ;;  %2391 = vmatpush1.bf16.msra.mxu0 %v4745_v61 }
 0x2df   : > { %2113 = vmatprep.subr.bf16.mxu1 %v4615_v38  ;;  %2392 = vmatprep.subr.bf16.mxu0 %v4749_v33 }
 0x2e2   : > { %2114 = vmatpush1.bf16.msra.mxu1 %v4619_v40  ;;  %2393 = vmatpush1.bf16.msra.mxu0 %v4753_v34 }
 0x2e3   : > { %2115 = vmatprep.subr.bf16.mxu1 %v4623_v41  ;;  %2394 = vmatprep.subr.bf16.mxu0 %v4757_v35 }
 0x2e6   : > { %2116 = vmatpush1.bf16.msra.mxu1 %v4627_v58  ;;  %2395 = vmatpush1.bf16.msra.mxu0 %v4761_v36 }
 0x2e7   : > { %2405 = vmatprep.subr.bf16.mxu0 %v4631_v55 }
 0x2e9   : > { %2118 = vmatmul.mubr.bf16.vlgmr.msra.gmra.mrb[12].mxu1 %v5018_v60  ;;  %2397 = vmatmul.mubr.bf16.vlgmr.msra.gmra.mrb[12].mxu0 %v3825_v48 }
 0x2ea   : > { %2406 = vmatpush1.bf16.msra.mxu0 %v4635_v23  ;;  %2437 = vmatprep.mubr.bf16.mxu0 %v3729_v15 }
 0x2eb   : > { %2407 = vmatprep.subr.bf16.mxu0 %v4639_v24 }
 0x2ee   : > { %2408 = vmatpush1.bf16.msra.mxu0 %v4645_v25 }
 0x2ef   : > { %2409 = vmatprep.subr.bf16.mxu0 %v4649_v26 }
 0x2f2   : > { %2410 = vmatpush1.bf16.msra.mxu0 %v4655_v47 }
 0x2f3   : > { %2411 = vmatprep.subr.bf16.mxu0 %v4659_v50 }
 0x2f6   : > { %2412 = vmatpush1.bf16.msra.mxu0 %v4663_v51 }
 0x2f7   : > { %2413 = vmatprep.subr.bf16.mxu0 %v4667_v3 }
 0x2fa   : > { %2414 = vmatpush1.bf16.msra.mxu0 %v4671_v4 }
 0x2fb   : > { %2415 = vmatprep.subr.bf16.mxu0 %v4675_v6 }
 0x2fc   : > { %v1479_v48 = vpop.f32.mrb[8].mxu1 }
 0x2fd   : > { %2714 = vst [vmem:[%s3726_s21 + $0x40] sm:$0xff] %v1479_v48  ;;  %v1481_v15 = vpop.f32.mrb[9].mxu1 }
 0x2fe   : > { %2715 = vst [vmem:[%s3726_s21 + $0x48] sm:$0xff] %v1481_v15  ;;  %v1483_v62 = vpop.f32.mrb[10].mxu1  ;;  %2416 = vmatpush1.bf16.msra.mxu0 %v4679_v12 }
 0x2ff   : > { %v1484_v63 = vpop.f32.mrb[11].mxu1  ;;  %2417 = vmatprep.subr.bf16.mxu0 %v4683_v42 }
 0x302   : > { %2418 = vmatpush1.bf16.msra.mxu0 %v4689_v46 }
 0x303   : > { %2419 = vmatprep.subr.bf16.mxu0 %v4693_v52 }
 0x306   : > { %2420 = vmatpush1.bf16.msra.mxu0 %v4697_v53 }
 0x307   : > { %2421 = vmatprep.subr.bf16.mxu0 %v4701_v54 }
 0x30a   : > { %2422 = vmatpush1.bf16.msra.mxu0 %v4705_v56 }
 0x30b   : > { %2423 = vmatprep.subr.bf16.mxu0 %v4709_v0 }
 0x30e   : > { %2424 = vmatpush1.bf16.msra.mxu0 %v4713_v18 }
 0x30f   : > { %2425 = vmatprep.subr.bf16.mxu0 %v4717_v19 }
 0x312   : > { %2426 = vmatpush1.bf16.msra.mxu0 %v4721_v20 }
 0x313   : > { %2427 = vmatprep.subr.bf16.mxu0 %v4725_v28 }
 0x316   : > { %2428 = vmatpush1.bf16.msra.mxu0 %v4729_v43 }
 0x317   : > { %2429 = vmatprep.subr.bf16.mxu0 %v4733_v44 }
 0x31a   : > { %2430 = vmatpush1.bf16.msra.mxu0 %v4737_v45 }
 0x31b   : > { %2431 = vmatprep.subr.bf16.mxu0 %v4741_v49 }
 0x31e   : > { %2432 = vmatpush1.bf16.msra.mxu0 %v4745_v61 }
 0x31f   : > { %2433 = vmatprep.subr.bf16.mxu0 %v4749_v33 }
 0x322   : > { %2434 = vmatpush1.bf16.msra.mxu0 %v4753_v34 }
 0x323   : > { %2435 = vmatprep.subr.bf16.mxu0 %v4757_v35 }
 0x326   : > { %2436 = vmatpush1.bf16.msra.mxu0 %v4761_v36 }
 0x329   : > { %2438 = vmatmul.mubr.bf16.vlgmr.msra.gmra.mrb[12].mxu0 %v5018_v60 }
 0x33c   : > { %v1799_v1 = vpop.f32.mrb[8].mxu0 }
 0x33d   : > { %2748 = vst [vmem:[%s3726_s21 + $0x50] sm:$0xff] %v1799_v1  ;;  %v1801_v2 = vpop.f32.mrb[9].mxu0 }
 0x33e   : > { %2749 = vst [vmem:[%s3726_s21 + $0x58] sm:$0xff] %v1801_v2  ;;  %v1803_v5 = vpop.f32.mrb[10].mxu0 }
 0x33f   : > { %v1804_v61 = vpop.f32.mrb[11].mxu0 }
 0x3bc   : > { %v2119_v11 = vpop.f32.mrb[12].mxu1 }
 0x3bd   : > { %2782 = vst [vmem:[%s3726_s21 + $0x60] sm:$0xff] %v2119_v11  ;;  %v2121_v13 = vpop.f32.mrb[13].mxu1 }
 0x3be   : > { %2783 = vst [vmem:[%s3726_s21 + $0x68] sm:$0xff] %v2121_v13  ;;  %v2123_v14 = vpop.f32.mrb[14].mxu1 }
 0x3bf   : > { %v2124_v16 = vpop.f32.mrb[15].mxu1 }
 0x3fc   : > { %v2439_v17 = vpop.f32.mrb[12].mxu0 }
 0x3fd   : > { %2816 = vst [vmem:[%s3726_s21 + $0x70] sm:$0xff] %v2439_v17  ;;  %v2441_v21 = vpop.f32.mrb[13].mxu0 }
 0x3fe   : > { %2817 = vst [vmem:[%s3726_s21 + $0x78] sm:$0xff] %v2441_v21  ;;  %v2443_v29 = vpop.f32.mrb[14].mxu0 }
 0x3ff   : > { %v2444_v31 = vpop.f32.mrb[15].mxu0 }
 0x400   : > { %3379 = shalt.err (!%p3376_p7)
}
 0x401   : > { %s3380_s6 = scalar_lea.hbm %s4883_s27, 2048  ;;  %s3384_s3 = scalar_lea.hbm %s4943_s2, 8192 }
 0x402   : > { %p3381_p1 = scmp.ne.s32.totalorder %s4883_s27, %s3380_s6  ;;  %p3385_p9 = scmp.lt.u32.totalorder %s4883_s27, %s4943_s2 }
 0x403   : > { %p3386_p5 = scmp.lt.u32.totalorder %s3384_s3, %s3380_s6  ;;  %p3388_p6 = scmp.lt.u32.totalorder %s3380_s6, %s4883_s27 }
 0x404   : > { %p3382_p2 = pnand %p3381_p1, %p3598_p11 }
 0x405   : > { %p3387_p0 = por %p3386_p5, %p3385_p9 }
 0x406   : > { %p3383_p4 = pneg %p3382_p2 }
 0x407   : > { %p3389_p8 = por %p3388_p6, %p3387_p0 }
 0x409   : > { %p3390_p10 = pnand %p3389_p8, %p3383_p4 }
 0x40b   : > { %3393 = shalt.err (!%p3390_p10)
}
 0x40c   : > { %s3475_s21 = smov 256   ;;  %s3476_s23 = smov 512  }
 0x40d   : > { %s3477_s24 = smov 16  }
 0x40e   : > { %2884 = dma.vmem_to_hbm [thread:$0]  (%p3598_p11), %s4885_s28, 2048, %s4883_s27, %s2452_s12, %s3475_s21, %s3476_s23, %s3477_s24  }
 0x40f PF: > { %p2901_p12 = scmp.ge.s32.totalorder %s3468_s16, 2  ;;  %s2482_s8 = sand.u32 1, %s3440_s9  }
 0x410   : > { %p5019_p13 = scmp.ne.s32.totalorder %s4975_s22, 0  ;;  %s2483_s29 = scalar_lea.sflag [#allocation4], %s2482_s8 }
 0x412   : > { %p2895_p3 = pnand %p2901_p12, %p5019_p13 }
 0x414   : > { %3435 = dma.done.wait (!%p2895_p3), %s2483_s29, 2048  }
 0x415   : > { %3437 = vsyncadd (!%p2895_p3), %s2483_s29, 4294965248  ;;  %s19_s16 = sadd.s32 1, %s3468_s16   ;;  %s5020_s12 = sld [smem:[#allocation11_spill]] }
 0x416   : > { %p16_p7 = scmp.ge.s32.totalorder %s19_s16, 6   ;;  %s5021_s14 = sld [smem:[#allocation12_spill]] }
 0x417   : > { %s5022_s26 = sld [smem:[#allocation13_spill]]  ;;  %s5023_s9 = smov %s3444_s10 }
 0x418   : > { %s5024_s10 = smov %s3448_s11  ;;  %s5025_s11 = smov %s3615_s17 }
 0x419   : > { %s5026_s13 = smov %s3464_s15  ;;  %18 = sbr.rel (!%p16_p7) target bundleno = 10 (0xa), region = 84 }
 0x41d   : > { %s5027_s15 = smov %s5022_s26 }
 0x420   :  { %2488 = vsyncpa [#allocation3], 1 }
 0x421   :  { %2490 = vsyncpa [#allocation3 + $0x1], 1 }
 0x422   :  { %2491 = vsyncpa [#allocation6], 1 }
 0x423   :  { %2492 = vsyncpa [#allocation4], 1 }
 0x424   :  { %2494 = vsyncpa [#allocation4 + $0x1], 1 }

</bundles_post_ra>
